<compile_context>
chip_gen: v7x
topology: tpu7x:2x2x1
jax: 0.10.0
libtpu: 0.0.40
codegen_flags: <defaults>
</compile_context>

<pallas_src>
import functools

import jax
import jax.numpy as jnp
from jax import lax
from jax.experimental import pallas as pl
from jax.experimental.pallas import tpu as pltpu


# ----------------------------------------------------------------------------
# Pallas kernel: 2-layer LSTM recurrence over one T-chunk + final linear head.
# ----------------------------------------------------------------------------
def tvl_lstm_kernel(x_ref,      # (Bp, t_chunk)  raw inputs, batch on sublanes, time on lanes
                    w_ref,      # (H, 12H)       [whh0_s | whh1_s | wih1_s] (transposed, g-scaled)
                    vec_ref,    # (1, 13H)       [w_ih0_s | b0_s | b1_s | wlin]
                    blin_ref,   # (1,)           linear head bias (SMEM)
                    out_ref,    # (Bp, 1)
                    state_ref,  # (4, Bp, H)     VMEM scratch: h0, c0, h1, c1 carried over grid
                    *, H, t_chunk, T_total):
    tb = pl.program_id(0)
    nblk = pl.num_programs(0)

    # Loop-invariant weight/bias loads, hoisted out of the recurrence.
    whh0 = w_ref[:, 0 * 4 * H:1 * 4 * H]          # (H, 4H)
    whh1 = w_ref[:, 1 * 4 * H:2 * 4 * H]          # (H, 4H)
    wih1 = w_ref[:, 2 * 4 * H:3 * 4 * H]          # (H, 4H)
    wih0 = vec_ref[:, 0 * H:4 * H]                # (1, 4H)
    b0 = vec_ref[:, 4 * H:8 * H]                  # (1, 4H)
    b1 = vec_ref[:, 8 * H:12 * H]                 # (1, 4H)
    wlin = vec_ref[:, 12 * H:13 * H]              # (1, H)   (lane offset 12H = 3*128 -> aligned)

    # First grid step: zero-init the carried state.
    @pl.when(tb == 0)
    def _init():
        state_ref[...] = jnp.zeros_like(state_ref)

    h0 = state_ref[0]
    c0 = state_ref[1]
    h1 = state_ref[2]
    c1 = state_ref[3]

    xv = x_ref[...]                               # (Bp, t_chunk)

    def gate_act(z):
        # One full-vreg sigmoid over all 4H gate columns; g-gate columns were pre-scaled
        # by 2 in the packer, so 2*sigmoid(2x) - 1 == tanh(x).
        s = jax.nn.sigmoid(z)
        i = s[:, 0:H]
        f = s[:, H:2 * H]
        g = 2.0 * s[:, 2 * H:3 * H] - 1.0
        o = s[:, 3 * H:4 * H]
        return i, f, g, o

    needs_mask = (T_total % t_chunk) != 0         # static Python bool (zero cost if False)

    # Fully static inner loop (static lane slices of xv, state carried in vregs).
    # TODO(synk): for very long T (t_chunk=128) consider a smaller inner unroll factor to
    # bound code size; irrelevant at the test shapes.
    for t in range(t_chunk):
        # Layer-0 input contribution: off the recurrence chain (no h/c dependence).
        x_t = xv[:, t:t + 1]                      # (Bp, 1)
        pre0 = x_t * wih0 + b0                    # (Bp, 4H)

        # ---- layer 0 ----
        rec0 = jnp.dot(h0, whh0, preferred_element_type=jnp.float32)   # (Bp, 4H)
        gates0 = pre0 + rec0
        i0, f0, g0, o0 = gate_act(gates0)
        c0n = f0 * c0 + i0 * g0
        h0n = o0 * jnp.tanh(c0n)

        # ---- layer 1 ----
        # rec1 depends only on h1_{t-1}: overlaps with the layer-0 chain above.
        rec1 = jnp.dot(h1, whh1, preferred_element_type=jnp.float32) + b1
        gates1 = jnp.dot(h0n, wih1, preferred_element_type=jnp.float32) + rec1
        i1, f1, g1, o1 = gate_act(gates1)
        c1n = f1 * c1 + i1 * g1
        h1n = o1 * jnp.tanh(c1n)

        if needs_mask:
            valid = (tb * t_chunk + t) < T_total
            h0 = jnp.where(valid, h0n, h0)
            c0 = jnp.where(valid, c0n, c0)
            h1 = jnp.where(valid, h1n, h1)
            c1 = jnp.where(valid, c1n, c1)
        else:
            h0, c0, h1, c1 = h0n, c0n, h1n, c1n

    # Persist state for the next T-chunk.
    state_ref[0] = h0
    state_ref[1] = c0
    state_ref[2] = h1
    state_ref[3] = c1

    # Linear head on the last top-layer hidden state: VPU mul + lane reduce
    # (avoids an N=1 MXU matmul); bias comes from SMEM.
    @pl.when(tb == nblk - 1)
    def _final():
        out_ref[...] = (jnp.sum(h1 * wlin, axis=-1, keepdims=True) + blin_ref[0])


# ----------------------------------------------------------------------------
# One-time parameter packing (run once per parameter set, NOT per forward call).
# ----------------------------------------------------------------------------
def prepare_tvl_params(params, hidden_size=32):
    H = hidden_size
    # g-gate columns scaled by 2 so tanh can be recovered from one full-vreg sigmoid.
    scale = jnp.concatenate([jnp.ones((2 * H,), jnp.float32),
                             jnp.full((H,), 2.0, jnp.float32),
                             jnp.ones((H,), jnp.float32)])                 # (4H,)

    w_ih0 = (params["w_ih0"][:, 0] * scale).reshape(1, 4 * H)              # (1, 4H)
    b0 = ((params["b_ih0"] + params["b_hh0"]) * scale).reshape(1, 4 * H)   # (1, 4H)
    b1 = ((params["b_ih1"] + params["b_hh1"]) * scale).reshape(1, 4 * H)   # (1, 4H)
    whh0_s = (params["w_hh0"] * scale[:, None]).T                          # (H, 4H)
    whh1_s = (params["w_hh1"] * scale[:, None]).T                          # (H, 4H)
    wih1_s = (params["w_ih1"] * scale[:, None]).T                          # (H, 4H)
    wlin = params["w_lin"].reshape(1, H)                                   # (1, H)

    w_slab = jnp.concatenate([whh0_s, whh1_s, wih1_s], axis=1).astype(jnp.float32)   # (H, 12H)
    vec_slab = jnp.concatenate([w_ih0, b0, b1, wlin], axis=1).astype(jnp.float32)    # (1, 13H)
    blin = params["b_lin"].reshape(1).astype(jnp.float32)                            # (1,)
    return {"w_slab": w_slab, "vec_slab": vec_slab, "blin": blin}


# ----------------------------------------------------------------------------
# Per-call wrapper: squeeze + pad the input, one pallas_call.
# ----------------------------------------------------------------------------
@jax.jit
def tvl_predictor_forward(x, prepared):
    """x: (B, T, 1) float32 (batch_first, like the PyTorch module)."""
    w_slab = prepared["w_slab"]
    vec_slab = prepared["vec_slab"]
    blin = prepared["blin"]
    H = w_slab.shape[0]

    B, T, _ = x.shape
    Bp = max(8, ((B + 7) // 8) * 8)               # pad batch to f32 sublane multiple
    t_chunk = T if T <= 128 else 128              # (Bp, 128) blocks satisfy the (8,128) rule
    T_pad = pl.cdiv(T, t_chunk) * t_chunk
    nblk = T_pad // t_chunk

    # Compact lane-dense input: (Bp, T_pad), batch on sublanes, time on lanes.
    x2d = x[:, :, 0].astype(jnp.float32)
    x_pad = jnp.pad(x2d, ((0, Bp - B), (0, T_pad - T)))

    kernel = functools.partial(tvl_lstm_kernel, H=H, t_chunk=t_chunk, T_total=T)

    out = pl.pallas_call(
        kernel,
        out_shape=jax.ShapeDtypeStruct((Bp, 1), jnp.float32),
        grid=(nblk,),
        in_specs=[
            pl.BlockSpec((Bp, t_chunk), lambda tb: (0, tb)),        # x: streamed per T-chunk
            pl.BlockSpec((H, 12 * H), lambda tb: (0, 0)),           # weight slab (resident)
            pl.BlockSpec((1, 13 * H), lambda tb: (0, 0)),           # vec slab (resident)
            pl.BlockSpec(memory_space=pltpu.MemorySpace.SMEM),      # blin scalar
        ],
        out_specs=pl.BlockSpec((Bp, 1), lambda tb: (0, 0)),
        scratch_shapes=[pltpu.VMEM((4, Bp, H), jnp.float32)],       # h0, c0, h1, c1 carry
        compiler_params=pltpu.CompilerParams(
            dimension_semantics=("arbitrary",),                     # sequential recurrence axis
            vmem_limit_bytes=16 * 1024 * 1024,
        ),
    )(x_pad, w_slab, vec_slab, blin)
    return out[:B]


# ----------------------------------------------------------------------------
# Pure-JAX reference (PyTorch nn.LSTM semantics) for self-check.
# ----------------------------------------------------------------------------
def reference_forward(x, params, hidden_size=32):
    H = hidden_size
    B, T, _ = x.shape

    def lstm_layer(seq, w_ih, w_hh, b_ih, b_hh):
        def step(carry, x_t):
            h, c = carry
            gates = x_t @ w_ih.T + h @ w_hh.T + b_ih + b_hh
            i = jax.nn.sigmoid(gates[:, 0:H])
            f = jax.nn.sigmoid(gates[:, H:2 * H])
            g = jnp.tanh(gates[:, 2 * H:3 * H])
            o = jax.nn.sigmoid(gates[:, 3 * H:4 * H])
            c = f * c + i * g
            h = o * jnp.tanh(c)
            return (h, c), h

        init = (jnp.zeros((B, H), jnp.float32), jnp.zeros((B, H), jnp.float32))
        _, hs = lax.scan(step, init, jnp.transpose(seq, (1, 0, 2)))
        return jnp.transpose(hs, (1, 0, 2))                          # (B, T, H)

    h0_seq = lstm_layer(x, params["w_ih0"], params["w_hh0"],
                        params["b_ih0"], params["b_hh0"])
    h1_seq = lstm_layer(h0_seq, params["w_ih1"], params["w_hh1"],
                        params["b_ih1"], params["b_hh1"])
    last = h1_seq[:, -1, :]
    return last @ params["w_lin"].T + params["b_lin"]


def init_params(key, hidden_size=32):
    H = hidden_size
    std = 1.0 / jnp.sqrt(jnp.float32(H))
    keys = jax.random.split(key, 10)

    def u(k, shape):
        return jax.random.uniform(k, shape, jnp.float32, -std, std)

    return {
        "w_ih0": u(keys[0], (4 * H, 1)),
        "w_hh0": u(keys[1], (4 * H, H)),
        "b_ih0": u(keys[2], (4 * H,)),
        "b_hh0": u(keys[3], (4 * H,)),
        "w_ih1": u(keys[4], (4 * H, H)),
        "w_hh1": u(keys[5], (4 * H, H)),
        "b_ih1": u(keys[6], (4 * H,)),
        "b_hh1": u(keys[7], (4 * H,)),
        "w_lin": u(keys[8], (1, H)),
        "b_lin": u(keys[9], (1,)),
    }


if __name__ == "__main__":
    B, T, H = 2, 8, 32
    key = jax.random.PRNGKey(0)
    k_x, k_p = jax.random.split(key)

    x = jax.random.normal(k_x, (B, T, 1), jnp.float32)
    params = init_params(k_p, hidden_size=H)

    prepared = prepare_tvl_params(params, hidden_size=H)   # one-time weight packing
    out = tvl_predictor_forward(x, prepared)
    out = jax.block_until_ready(out)

    ref = reference_forward(x, params, hidden_size=H)
    assert out.shape == (B, 1)
    # tanh-via-sigmoid trick introduces ~1e-6-level f32 differences vs the tanh reference
    assert jnp.allclose(out, ref, atol=1e-4, rtol=1e-4), (out, ref)

    print("KERNEL_OK")
</pallas_src>

<mosaic_0001>
module attributes {stable_mosaic.version = 11 : i64} {
  func.func @tvl_lstm_kernel(%arg0: i32, %arg1: memref<8x8xf32, #tpu.memory_space<vmem>>, %arg2: memref<32x384xf32, #tpu.memory_space<vmem>>, %arg3: memref<1x416xf32, #tpu.memory_space<vmem>>, %arg4: memref<1xf32, #tpu.memory_space<smem>>, %arg5: memref<8x1xf32, #tpu.memory_space<vmem>>, %arg6: memref<4x8x32xf32, #tpu.memory_space<vmem>>) attributes {dimension_semantics = [#tpu.dimension_semantics<arbitrary>], iteration_bounds = array<i64: 1>, scalar_prefetch = 0 : i64, scratch_operands = 1 : i64, tpu.core_type = #tpu.core_type<tc>, window_params = [{transform_indices = @transform_0, window_bounds = array<i64: 8, 8>}, {pipeline_mode = #tpu.pipeline_mode<synchronous>, transform_indices = @transform_1, window_bounds = array<i64: 32, 384>}, {pipeline_mode = #tpu.pipeline_mode<synchronous>, transform_indices = @transform_2, window_bounds = array<i64: 1, 416>}, {transform_indices = @transform_3, window_bounds = array<i64: 1>}, {pipeline_mode = #tpu.pipeline_mode<synchronous>, transform_indices = @transform_4, window_bounds = array<i64: 8, 1>}]} {
    %c0 = arith.constant 0 : index
    %c0_0 = arith.constant 0 : index
    %0 = vector.load %arg2[%c0, %c0_0] : memref<32x384xf32, #tpu.memory_space<vmem>>, vector<32x128xf32>
    %c0_1 = arith.constant 0 : index
    %c128 = arith.constant 128 : index
    %1 = vector.load %arg2[%c0_1, %c128] : memref<32x384xf32, #tpu.memory_space<vmem>>, vector<32x128xf32>
    %c0_2 = arith.constant 0 : index
    %c256 = arith.constant 256 : index
    %2 = vector.load %arg2[%c0_2, %c256] : memref<32x384xf32, #tpu.memory_space<vmem>>, vector<32x128xf32>
    %c0_3 = arith.constant 0 : index
    %c0_4 = arith.constant 0 : index
    %3 = vector.load %arg3[%c0_3, %c0_4] : memref<1x416xf32, #tpu.memory_space<vmem>>, vector<1x128xf32>
    %c0_5 = arith.constant 0 : index
    %c128_6 = arith.constant 128 : index
    %4 = vector.load %arg3[%c0_5, %c128_6] : memref<1x416xf32, #tpu.memory_space<vmem>>, vector<1x128xf32>
    %c0_7 = arith.constant 0 : index
    %c256_8 = arith.constant 256 : index
    %5 = vector.load %arg3[%c0_7, %c256_8] : memref<1x416xf32, #tpu.memory_space<vmem>>, vector<1x128xf32>
    %c0_9 = arith.constant 0 : index
    %c384 = arith.constant 384 : index
    %6 = vector.load %arg3[%c0_9, %c384] : memref<1x416xf32, #tpu.memory_space<vmem>>, vector<1x32xf32>
    %c0_i32 = arith.constant 0 : i32
    %7 = arith.cmpi eq, %arg0, %c0_i32 : i32
    %8 = arith.extui %7 : i1 to i32
    %c0_i32_10 = arith.constant 0 : i32
    %9 = arith.cmpi ne, %8, %c0_i32_10 : i32
    scf.if %9 {
      %cst_107 = arith.constant 0.000000e+00 : f32
      %426 = vector.broadcast %cst_107 : f32 to vector<4x8x32xf32>
      %c0_108 = arith.constant 0 : index
      %c0_109 = arith.constant 0 : index
      %c0_110 = arith.constant 0 : index
      %427 = vector.load %arg6[%c0_108, %c0_109, %c0_110] : memref<4x8x32xf32, #tpu.memory_space<vmem>>, vector<4x8x32xf32>
      tpu.vector_store %arg6[%c0_108, %c0_109, %c0_110], %426 {strides = array<i32>} : memref<4x8x32xf32, #tpu.memory_space<vmem>>, vector<4x8x32xf32>,
    } else {
    }
    %c0_11 = arith.constant 0 : index
    %c0_12 = arith.constant 0 : index
    %c0_13 = arith.constant 0 : index
    %10 = vector.load %arg6[%c0_11, %c0_12, %c0_13] : memref<4x8x32xf32, #tpu.memory_space<vmem>>, vector<1x8x32xf32>
    %11 = vector.shape_cast %10 : vector<1x8x32xf32> to vector<8x32xf32>
    %c1 = arith.constant 1 : index
    %c0_14 = arith.constant 0 : index
    %c0_15 = arith.constant 0 : index
    %12 = vector.load %arg6[%c1, %c0_14, %c0_15] : memref<4x8x32xf32, #tpu.memory_space<vmem>>, vector<1x8x32xf32>
    %13 = vector.shape_cast %12 : vector<1x8x32xf32> to vector<8x32xf32>
    %c2 = arith.constant 2 : index
    %c0_16 = arith.constant 0 : index
    %c0_17 = arith.constant 0 : index
    %14 = vector.load %arg6[%c2, %c0_16, %c0_17] : memref<4x8x32xf32, #tpu.memory_space<vmem>>, vector<1x8x32xf32>
    %15 = vector.shape_cast %14 : vector<1x8x32xf32> to vector<8x32xf32>
    %c3 = arith.constant 3 : index
    %c0_18 = arith.constant 0 : index
    %c0_19 = arith.constant 0 : index
    %16 = vector.load %arg6[%c3, %c0_18, %c0_19] : memref<4x8x32xf32, #tpu.memory_space<vmem>>, vector<1x8x32xf32>
    %17 = vector.shape_cast %16 : vector<1x8x32xf32> to vector<8x32xf32>
    %c0_20 = arith.constant 0 : index
    %c0_21 = arith.constant 0 : index
    %18 = vector.load %arg1[%c0_20, %c0_21] : memref<8x8xf32, #tpu.memory_space<vmem>>, vector<8x8xf32>
    %19 = vector.extract_strided_slice %18 {offsets = [0, 0], sizes = [8, 1], strides = [1, 1]} : vector<8x8xf32> to vector<8x1xf32>
    %20 = vector.broadcast %19 : vector<8x1xf32> to vector<8x128xf32>
    %21 = vector.broadcast %3 : vector<1x128xf32> to vector<8x128xf32>
    %22 = arith.mulf %20, %21 : vector<8x128xf32>
    %23 = vector.broadcast %4 : vector<1x128xf32> to vector<8x128xf32>
    %24 = arith.addf %22, %23 : vector<8x128xf32>
    %cst = arith.constant dense<0.000000e+00> : vector<8x128xf32>
    %25 = tpu.matmul %11, %0, %cst {dimension_numbers = #tpu.dot_dimension_numbers<[1], [0], [0], [1], [0, 0, 1, 1], [], []>} : vector<8x32xf32>, vector<32x128xf32>, vector<8x128xf32> -> vector<8x128xf32>
    %26 = arith.addf %24, %25 : vector<8x128xf32>
    %27 = arith.negf %26 : vector<8x128xf32>
    %28 = math.exp %27 : vector<8x128xf32>
    %cst_22 = arith.constant 1.000000e+00 : f32
    %29 = vector.broadcast %cst_22 : f32 to vector<8x128xf32>
    %30 = arith.addf %29, %28 : vector<8x128xf32>
    %31 = arith.divf %29, %30 : vector<8x128xf32>
    %32 = vector.extract_strided_slice %31 {offsets = [0, 0], sizes = [8, 32], strides = [1, 1]} : vector<8x128xf32> to vector<8x32xf32>
    %33 = vector.extract_strided_slice %31 {offsets = [0, 32], sizes = [8, 32], strides = [1, 1]} : vector<8x128xf32> to vector<8x32xf32>
    %34 = vector.extract_strided_slice %31 {offsets = [0, 64], sizes = [8, 32], strides = [1, 1]} : vector<8x128xf32> to vector<8x32xf32>
    %cst_23 = arith.constant 2.000000e+00 : f32
    %35 = vector.broadcast %cst_23 : f32 to vector<8x32xf32>
    %36 = arith.mulf %35, %34 : vector<8x32xf32>
    %cst_24 = arith.constant 1.000000e+00 : f32
    %37 = vector.broadcast %cst_24 : f32 to vector<8x32xf32>
    %38 = arith.subf %36, %37 : vector<8x32xf32>
    %39 = vector.extract_strided_slice %31 {offsets = [0, 96], sizes = [8, 32], strides = [1, 1]} : vector<8x128xf32> to vector<8x32xf32>
    %40 = arith.mulf %33, %13 : vector<8x32xf32>
    %41 = arith.mulf %32, %38 : vector<8x32xf32>
    %42 = arith.addf %40, %41 : vector<8x32xf32>
    %43 = math.tanh %42 : vector<8x32xf32>
    %44 = arith.mulf %39, %43 : vector<8x32xf32>
    %cst_25 = arith.constant dense<0.000000e+00> : vector<8x128xf32>
    %45 = tpu.matmul %15, %1, %cst_25 {dimension_numbers = #tpu.dot_dimension_numbers<[1], [0], [0], [1], [0, 0, 1, 1], [], []>} : vector<8x32xf32>, vector<32x128xf32>, vector<8x128xf32> -> vector<8x128xf32>
    %46 = vector.broadcast %5 : vector<1x128xf32> to vector<8x128xf32>
    %47 = arith.addf %45, %46 : vector<8x128xf32>
    %cst_26 = arith.constant dense<0.000000e+00> : vector<8x128xf32>
    %48 = tpu.matmul %44, %2, %cst_26 {dimension_numbers = #tpu.dot_dimension_numbers<[1], [0], [0], [1], [0, 0, 1, 1], [], []>} : vector<8x32xf32>, vector<32x128xf32>, vector<8x128xf32> -> vector<8x128xf32>
    %49 = arith.addf %48, %47 : vector<8x128xf32>
    %50 = arith.negf %49 : vector<8x128xf32>
    %51 = math.exp %50 : vector<8x128xf32>
    %cst_27 = arith.constant 1.000000e+00 : f32
    %52 = vector.broadcast %cst_27 : f32 to vector<8x128xf32>
    %53 = arith.addf %52, %51 : vector<8x128xf32>
    %54 = arith.divf %52, %53 : vector<8x128xf32>
    %55 = vector.extract_strided_slice %54 {offsets = [0, 0], sizes = [8, 32], strides = [1, 1]} : vector<8x128xf32> to vector<8x32xf32>
    %56 = vector.extract_strided_slice %54 {offsets = [0, 32], sizes = [8, 32], strides = [1, 1]} : vector<8x128xf32> to vector<8x32xf32>
    %57 = vector.extract_strided_slice %54 {offsets = [0, 64], sizes = [8, 32], strides = [1, 1]} : vector<8x128xf32> to vector<8x32xf32>
    %cst_28 = arith.constant 2.000000e+00 : f32
    %58 = vector.broadcast %cst_28 : f32 to vector<8x32xf32>
    %59 = arith.mulf %58, %57 : vector<8x32xf32>
    %cst_29 = arith.constant 1.000000e+00 : f32
    %60 = vector.broadcast %cst_29 : f32 to vector<8x32xf32>
    %61 = arith.subf %59, %60 : vector<8x32xf32>
    %62 = vector.extract_strided_slice %54 {offsets = [0, 96], sizes = [8, 32], strides = [1, 1]} : vector<8x128xf32> to vector<8x32xf32>
    %63 = arith.mulf %56, %17 : vector<8x32xf32>
    %64 = arith.mulf %55, %61 : vector<8x32xf32>
    %65 = arith.addf %63, %64 : vector<8x32xf32>
    %66 = math.tanh %65 : vector<8x32xf32>
    %67 = arith.mulf %62, %66 : vector<8x32xf32>
    %68 = vector.extract_strided_slice %18 {offsets = [0, 1], sizes = [8, 1], strides = [1, 1]} : vector<8x8xf32> to vector<8x1xf32>
    %69 = vector.broadcast %68 : vector<8x1xf32> to vector<8x128xf32>
    %70 = vector.broadcast %3 : vector<1x128xf32> to vector<8x128xf32>
    %71 = arith.mulf %69, %70 : vector<8x128xf32>
    %72 = vector.broadcast %4 : vector<1x128xf32> to vector<8x128xf32>
    %73 = arith.addf %71, %72 : vector<8x128xf32>
    %cst_30 = arith.constant dense<0.000000e+00> : vector<8x128xf32>
    %74 = tpu.matmul %44, %0, %cst_30 {dimension_numbers = #tpu.dot_dimension_numbers<[1], [0], [0], [1], [0, 0, 1, 1], [], []>} : vector<8x32xf32>, vector<32x128xf32>, vector<8x128xf32> -> vector<8x128xf32>
    %75 = arith.addf %73, %74 : vector<8x128xf32>
    %76 = arith.negf %75 : vector<8x128xf32>
    %77 = math.exp %76 : vector<8x128xf32>
    %cst_31 = arith.constant 1.000000e+00 : f32
    %78 = vector.broadcast %cst_31 : f32 to vector<8x128xf32>
    %79 = arith.addf %78, %77 : vector<8x128xf32>
    %80 = arith.divf %78, %79 : vector<8x128xf32>
    %81 = vector.extract_strided_slice %80 {offsets = [0, 0], sizes = [8, 32], strides = [1, 1]} : vector<8x128xf32> to vector<8x32xf32>
    %82 = vector.extract_strided_slice %80 {offsets = [0, 32], sizes = [8, 32], strides = [1, 1]} : vector<8x128xf32> to vector<8x32xf32>
    %83 = vector.extract_strided_slice %80 {offsets = [0, 64], sizes = [8, 32], strides = [1, 1]} : vector<8x128xf32> to vector<8x32xf32>
    %cst_32 = arith.constant 2.000000e+00 : f32
    %84 = vector.broadcast %cst_32 : f32 to vector<8x32xf32>
    %85 = arith.mulf %84, %83 : vector<8x32xf32>
    %cst_33 = arith.constant 1.000000e+00 : f32
    %86 = vector.broadcast %cst_33 : f32 to vector<8x32xf32>
    %87 = arith.subf %85, %86 : vector<8x32xf32>
    %88 = vector.extract_strided_slice %80 {offsets = [0, 96], sizes = [8, 32], strides = [1, 1]} : vector<8x128xf32> to vector<8x32xf32>
    %89 = arith.mulf %82, %42 : vector<8x32xf32>
    %90 = arith.mulf %81, %87 : vector<8x32xf32>
    %91 = arith.addf %89, %90 : vector<8x32xf32>
    %92 = math.tanh %91 : vector<8x32xf32>
    %93 = arith.mulf %88, %92 : vector<8x32xf32>
    %cst_34 = arith.constant dense<0.000000e+00> : vector<8x128xf32>
    %94 = tpu.matmul %67, %1, %cst_34 {dimension_numbers = #tpu.dot_dimension_numbers<[1], [0], [0], [1], [0, 0, 1, 1], [], []>} : vector<8x32xf32>, vector<32x128xf32>, vector<8x128xf32> -> vector<8x128xf32>
    %95 = vector.broadcast %5 : vector<1x128xf32> to vector<8x128xf32>
    %96 = arith.addf %94, %95 : vector<8x128xf32>
    %cst_35 = arith.constant dense<0.000000e+00> : vector<8x128xf32>
    %97 = tpu.matmul %93, %2, %cst_35 {dimension_numbers = #tpu.dot_dimension_numbers<[1], [0], [0], [1], [0, 0, 1, 1], [], []>} : vector<8x32xf32>, vector<32x128xf32>, vector<8x128xf32> -> vector<8x128xf32>
    %98 = arith.addf %97, %96 : vector<8x128xf32>
    %99 = arith.negf %98 : vector<8x128xf32>
    %100 = math.exp %99 : vector<8x128xf32>
    %cst_36 = arith.constant 1.000000e+00 : f32
    %101 = vector.broadcast %cst_36 : f32 to vector<8x128xf32>
    %102 = arith.addf %101, %100 : vector<8x128xf32>
    %103 = arith.divf %101, %102 : vector<8x128xf32>
    %104 = vector.extract_strided_slice %103 {offsets = [0, 0], sizes = [8, 32], strides = [1, 1]} : vector<8x128xf32> to vector<8x32xf32>
    %105 = vector.extract_strided_slice %103 {offsets = [0, 32], sizes = [8, 32], strides = [1, 1]} : vector<8x128xf32> to vector<8x32xf32>
    %106 = vector.extract_strided_slice %103 {offsets = [0, 64], sizes = [8, 32], strides = [1, 1]} : vector<8x128xf32> to vector<8x32xf32>
    %cst_37 = arith.constant 2.000000e+00 : f32
    %107 = vector.broadcast %cst_37 : f32 to vector<8x32xf32>
    %108 = arith.mulf %107, %106 : vector<8x32xf32>
    %cst_38 = arith.constant 1.000000e+00 : f32
    %109 = vector.broadcast %cst_38 : f32 to vector<8x32xf32>
    %110 = arith.subf %108, %109 : vector<8x32xf32>
    %111 = vector.extract_strided_slice %103 {offsets = [0, 96], sizes = [8, 32], strides = [1, 1]} : vector<8x128xf32> to vector<8x32xf32>
    %112 = arith.mulf %105, %65 : vector<8x32xf32>
    %113 = arith.mulf %104, %110 : vector<8x32xf32>
    %114 = arith.addf %112, %113 : vector<8x32xf32>
    %115 = math.tanh %114 : vector<8x32xf32>
    %116 = arith.mulf %111, %115 : vector<8x32xf32>
    %117 = vector.extract_strided_slice %18 {offsets = [0, 2], sizes = [8, 1], strides = [1, 1]} : vector<8x8xf32> to vector<8x1xf32>
    %118 = vector.broadcast %117 : vector<8x1xf32> to vector<8x128xf32>
    %119 = vector.broadcast %3 : vector<1x128xf32> to vector<8x128xf32>
    %120 = arith.mulf %118, %119 : vector<8x128xf32>
    %121 = vector.broadcast %4 : vector<1x128xf32> to vector<8x128xf32>
    %122 = arith.addf %120, %121 : vector<8x128xf32>
    %cst_39 = arith.constant dense<0.000000e+00> : vector<8x128xf32>
    %123 = tpu.matmul %93, %0, %cst_39 {dimension_numbers = #tpu.dot_dimension_numbers<[1], [0], [0], [1], [0, 0, 1, 1], [], []>} : vector<8x32xf32>, vector<32x128xf32>, vector<8x128xf32> -> vector<8x128xf32>
    %124 = arith.addf %122, %123 : vector<8x128xf32>
    %125 = arith.negf %124 : vector<8x128xf32>
    %126 = math.exp %125 : vector<8x128xf32>
    %cst_40 = arith.constant 1.000000e+00 : f32
    %127 = vector.broadcast %cst_40 : f32 to vector<8x128xf32>
    %128 = arith.addf %127, %126 : vector<8x128xf32>
    %129 = arith.divf %127, %128 : vector<8x128xf32>
    %130 = vector.extract_strided_slice %129 {offsets = [0, 0], sizes = [8, 32], strides = [1, 1]} : vector<8x128xf32> to vector<8x32xf32>
    %131 = vector.extract_strided_slice %129 {offsets = [0, 32], sizes = [8, 32], strides = [1, 1]} : vector<8x128xf32> to vector<8x32xf32>
    %132 = vector.extract_strided_slice %129 {offsets = [0, 64], sizes = [8, 32], strides = [1, 1]} : vector<8x128xf32> to vector<8x32xf32>
    %cst_41 = arith.constant 2.000000e+00 : f32
    %133 = vector.broadcast %cst_41 : f32 to vector<8x32xf32>
    %134 = arith.mulf %133, %132 : vector<8x32xf32>
    %cst_42 = arith.constant 1.000000e+00 : f32
    %135 = vector.broadcast %cst_42 : f32 to vector<8x32xf32>
    %136 = arith.subf %134, %135 : vector<8x32xf32>
    %137 = vector.extract_strided_slice %129 {offsets = [0, 96], sizes = [8, 32], strides = [1, 1]} : vector<8x128xf32> to vector<8x32xf32>
    %138 = arith.mulf %131, %91 : vector<8x32xf32>
    %139 = arith.mulf %130, %136 : vector<8x32xf32>
    %140 = arith.addf %138, %139 : vector<8x32xf32>
    %141 = math.tanh %140 : vector<8x32xf32>
    %142 = arith.mulf %137, %141 : vector<8x32xf32>
    %cst_43 = arith.constant dense<0.000000e+00> : vector<8x128xf32>
    %143 = tpu.matmul %116, %1, %cst_43 {dimension_numbers = #tpu.dot_dimension_numbers<[1], [0], [0], [1], [0, 0, 1, 1], [], []>} : vector<8x32xf32>, vector<32x128xf32>, vector<8x128xf32> -> vector<8x128xf32>
    %144 = vector.broadcast %5 : vector<1x128xf32> to vector<8x128xf32>
    %145 = arith.addf %143, %144 : vector<8x128xf32>
    %cst_44 = arith.constant dense<0.000000e+00> : vector<8x128xf32>
    %146 = tpu.matmul %142, %2, %cst_44 {dimension_numbers = #tpu.dot_dimension_numbers<[1], [0], [0], [1], [0, 0, 1, 1], [], []>} : vector<8x32xf32>, vector<32x128xf32>, vector<8x128xf32> -> vector<8x128xf32>
    %147 = arith.addf %146, %145 : vector<8x128xf32>
    %148 = arith.negf %147 : vector<8x128xf32>
    %149 = math.exp %148 : vector<8x128xf32>
    %cst_45 = arith.constant 1.000000e+00 : f32
    %150 = vector.broadcast %cst_45 : f32 to vector<8x128xf32>
    %151 = arith.addf %150, %149 : vector<8x128xf32>
    %152 = arith.divf %150, %151 : vector<8x128xf32>
    %153 = vector.extract_strided_slice %152 {offsets = [0, 0], sizes = [8, 32], strides = [1, 1]} : vector<8x128xf32> to vector<8x32xf32>
    %154 = vector.extract_strided_slice %152 {offsets = [0, 32], sizes = [8, 32], strides = [1, 1]} : vector<8x128xf32> to vector<8x32xf32>
    %155 = vector.extract_strided_slice %152 {offsets = [0, 64], sizes = [8, 32], strides = [1, 1]} : vector<8x128xf32> to vector<8x32xf32>
    %cst_46 = arith.constant 2.000000e+00 : f32
    %156 = vector.broadcast %cst_46 : f32 to vector<8x32xf32>
    %157 = arith.mulf %156, %155 : vector<8x32xf32>
    %cst_47 = arith.constant 1.000000e+00 : f32
    %158 = vector.broadcast %cst_47 : f32 to vector<8x32xf32>
    %159 = arith.subf %157, %158 : vector<8x32xf32>
    %160 = vector.extract_strided_slice %152 {offsets = [0, 96], sizes = [8, 32], strides = [1, 1]} : vector<8x128xf32> to vector<8x32xf32>
    %161 = arith.mulf %154, %114 : vector<8x32xf32>
    %162 = arith.mulf %153, %159 : vector<8x32xf32>
    %163 = arith.addf %161, %162 : vector<8x32xf32>
    %164 = math.tanh %163 : vector<8x32xf32>
    %165 = arith.mulf %160, %164 : vector<8x32xf32>
    %166 = vector.extract_strided_slice %18 {offsets = [0, 3], sizes = [8, 1], strides = [1, 1]} : vector<8x8xf32> to vector<8x1xf32>
    %167 = vector.broadcast %166 : vector<8x1xf32> to vector<8x128xf32>
    %168 = vector.broadcast %3 : vector<1x128xf32> to vector<8x128xf32>
    %169 = arith.mulf %167, %168 : vector<8x128xf32>
    %170 = vector.broadcast %4 : vector<1x128xf32> to vector<8x128xf32>
    %171 = arith.addf %169, %170 : vector<8x128xf32>
    %cst_48 = arith.constant dense<0.000000e+00> : vector<8x128xf32>
    %172 = tpu.matmul %142, %0, %cst_48 {dimension_numbers = #tpu.dot_dimension_numbers<[1], [0], [0], [1], [0, 0, 1, 1], [], []>} : vector<8x32xf32>, vector<32x128xf32>, vector<8x128xf32> -> vector<8x128xf32>
    %173 = arith.addf %171, %172 : vector<8x128xf32>
    %174 = arith.negf %173 : vector<8x128xf32>
    %175 = math.exp %174 : vector<8x128xf32>
    %cst_49 = arith.constant 1.000000e+00 : f32
    %176 = vector.broadcast %cst_49 : f32 to vector<8x128xf32>
    %177 = arith.addf %176, %175 : vector<8x128xf32>
    %178 = arith.divf %176, %177 : vector<8x128xf32>
    %179 = vector.extract_strided_slice %178 {offsets = [0, 0], sizes = [8, 32], strides = [1, 1]} : vector<8x128xf32> to vector<8x32xf32>
    %180 = vector.extract_strided_slice %178 {offsets = [0, 32], sizes = [8, 32], strides = [1, 1]} : vector<8x128xf32> to vector<8x32xf32>
    %181 = vector.extract_strided_slice %178 {offsets = [0, 64], sizes = [8, 32], strides = [1, 1]} : vector<8x128xf32> to vector<8x32xf32>
    %cst_50 = arith.constant 2.000000e+00 : f32
    %182 = vector.broadcast %cst_50 : f32 to vector<8x32xf32>
    %183 = arith.mulf %182, %181 : vector<8x32xf32>
    %cst_51 = arith.constant 1.000000e+00 : f32
    %184 = vector.broadcast %cst_51 : f32 to vector<8x32xf32>
    %185 = arith.subf %183, %184 : vector<8x32xf32>
    %186 = vector.extract_strided_slice %178 {offsets = [0, 96], sizes = [8, 32], strides = [1, 1]} : vector<8x128xf32> to vector<8x32xf32>
    %187 = arith.mulf %180, %140 : vector<8x32xf32>
    %188 = arith.mulf %179, %185 : vector<8x32xf32>
    %189 = arith.addf %187, %188 : vector<8x32xf32>
    %190 = math.tanh %189 : vector<8x32xf32>
    %191 = arith.mulf %186, %190 : vector<8x32xf32>
    %cst_52 = arith.constant dense<0.000000e+00> : vector<8x128xf32>
    %192 = tpu.matmul %165, %1, %cst_52 {dimension_numbers = #tpu.dot_dimension_numbers<[1], [0], [0], [1], [0, 0, 1, 1], [], []>} : vector<8x32xf32>, vector<32x128xf32>, vector<8x128xf32> -> vector<8x128xf32>
    %193 = vector.broadcast %5 : vector<1x128xf32> to vector<8x128xf32>
    %194 = arith.addf %192, %193 : vector<8x128xf32>
    %cst_53 = arith.constant dense<0.000000e+00> : vector<8x128xf32>
    %195 = tpu.matmul %191, %2, %cst_53 {dimension_numbers = #tpu.dot_dimension_numbers<[1], [0], [0], [1], [0, 0, 1, 1], [], []>} : vector<8x32xf32>, vector<32x128xf32>, vector<8x128xf32> -> vector<8x128xf32>
    %196 = arith.addf %195, %194 : vector<8x128xf32>
    %197 = arith.negf %196 : vector<8x128xf32>
    %198 = math.exp %197 : vector<8x128xf32>
    %cst_54 = arith.constant 1.000000e+00 : f32
    %199 = vector.broadcast %cst_54 : f32 to vector<8x128xf32>
    %200 = arith.addf %199, %198 : vector<8x128xf32>
    %201 = arith.divf %199, %200 : vector<8x128xf32>
    %202 = vector.extract_strided_slice %201 {offsets = [0, 0], sizes = [8, 32], strides = [1, 1]} : vector<8x128xf32> to vector<8x32xf32>
    %203 = vector.extract_strided_slice %201 {offsets = [0, 32], sizes = [8, 32], strides = [1, 1]} : vector<8x128xf32> to vector<8x32xf32>
    %204 = vector.extract_strided_slice %201 {offsets = [0, 64], sizes = [8, 32], strides = [1, 1]} : vector<8x128xf32> to vector<8x32xf32>
    %cst_55 = arith.constant 2.000000e+00 : f32
    %205 = vector.broadcast %cst_55 : f32 to vector<8x32xf32>
    %206 = arith.mulf %205, %204 : vector<8x32xf32>
    %cst_56 = arith.constant 1.000000e+00 : f32
    %207 = vector.broadcast %cst_56 : f32 to vector<8x32xf32>
    %208 = arith.subf %206, %207 : vector<8x32xf32>
    %209 = vector.extract_strided_slice %201 {offsets = [0, 96], sizes = [8, 32], strides = [1, 1]} : vector<8x128xf32> to vector<8x32xf32>
    %210 = arith.mulf %203, %163 : vector<8x32xf32>
    %211 = arith.mulf %202, %208 : vector<8x32xf32>
    %212 = arith.addf %210, %211 : vector<8x32xf32>
    %213 = math.tanh %212 : vector<8x32xf32>
    %214 = arith.mulf %209, %213 : vector<8x32xf32>
    %215 = vector.extract_strided_slice %18 {offsets = [0, 4], sizes = [8, 1], strides = [1, 1]} : vector<8x8xf32> to vector<8x1xf32>
    %216 = vector.broadcast %215 : vector<8x1xf32> to vector<8x128xf32>
    %217 = vector.broadcast %3 : vector<1x128xf32> to vector<8x128xf32>
    %218 = arith.mulf %216, %217 : vector<8x128xf32>
    %219 = vector.broadcast %4 : vector<1x128xf32> to vector<8x128xf32>
    %220 = arith.addf %218, %219 : vector<8x128xf32>
    %cst_57 = arith.constant dense<0.000000e+00> : vector<8x128xf32>
    %221 = tpu.matmul %191, %0, %cst_57 {dimension_numbers = #tpu.dot_dimension_numbers<[1], [0], [0], [1], [0, 0, 1, 1], [], []>} : vector<8x32xf32>, vector<32x128xf32>, vector<8x128xf32> -> vector<8x128xf32>
    %222 = arith.addf %220, %221 : vector<8x128xf32>
    %223 = arith.negf %222 : vector<8x128xf32>
    %224 = math.exp %223 : vector<8x128xf32>
    %cst_58 = arith.constant 1.000000e+00 : f32
    %225 = vector.broadcast %cst_58 : f32 to vector<8x128xf32>
    %226 = arith.addf %225, %224 : vector<8x128xf32>
    %227 = arith.divf %225, %226 : vector<8x128xf32>
    %228 = vector.extract_strided_slice %227 {offsets = [0, 0], sizes = [8, 32], strides = [1, 1]} : vector<8x128xf32> to vector<8x32xf32>
    %229 = vector.extract_strided_slice %227 {offsets = [0, 32], sizes = [8, 32], strides = [1, 1]} : vector<8x128xf32> to vector<8x32xf32>
    %230 = vector.extract_strided_slice %227 {offsets = [0, 64], sizes = [8, 32], strides = [1, 1]} : vector<8x128xf32> to vector<8x32xf32>
    %cst_59 = arith.constant 2.000000e+00 : f32
    %231 = vector.broadcast %cst_59 : f32 to vector<8x32xf32>
    %232 = arith.mulf %231, %230 : vector<8x32xf32>
    %cst_60 = arith.constant 1.000000e+00 : f32
    %233 = vector.broadcast %cst_60 : f32 to vector<8x32xf32>
    %234 = arith.subf %232, %233 : vector<8x32xf32>
    %235 = vector.extract_strided_slice %227 {offsets = [0, 96], sizes = [8, 32], strides = [1, 1]} : vector<8x128xf32> to vector<8x32xf32>
    %236 = arith.mulf %229, %189 : vector<8x32xf32>
    %237 = arith.mulf %228, %234 : vector<8x32xf32>
    %238 = arith.addf %236, %237 : vector<8x32xf32>
    %239 = math.tanh %238 : vector<8x32xf32>
    %240 = arith.mulf %235, %239 : vector<8x32xf32>
    %cst_61 = arith.constant dense<0.000000e+00> : vector<8x128xf32>
    %241 = tpu.matmul %214, %1, %cst_61 {dimension_numbers = #tpu.dot_dimension_numbers<[1], [0], [0], [1], [0, 0, 1, 1], [], []>} : vector<8x32xf32>, vector<32x128xf32>, vector<8x128xf32> -> vector<8x128xf32>
    %242 = vector.broadcast %5 : vector<1x128xf32> to vector<8x128xf32>
    %243 = arith.addf %241, %242 : vector<8x128xf32>
    %cst_62 = arith.constant dense<0.000000e+00> : vector<8x128xf32>
    %244 = tpu.matmul %240, %2, %cst_62 {dimension_numbers = #tpu.dot_dimension_numbers<[1], [0], [0], [1], [0, 0, 1, 1], [], []>} : vector<8x32xf32>, vector<32x128xf32>, vector<8x128xf32> -> vector<8x128xf32>
    %245 = arith.addf %244, %243 : vector<8x128xf32>
    %246 = arith.negf %245 : vector<8x128xf32>
    %247 = math.exp %246 : vector<8x128xf32>
    %cst_63 = arith.constant 1.000000e+00 : f32
    %248 = vector.broadcast %cst_63 : f32 to vector<8x128xf32>
    %249 = arith.addf %248, %247 : vector<8x128xf32>
    %250 = arith.divf %248, %249 : vector<8x128xf32>
    %251 = vector.extract_strided_slice %250 {offsets = [0, 0], sizes = [8, 32], strides = [1, 1]} : vector<8x128xf32> to vector<8x32xf32>
    %252 = vector.extract_strided_slice %250 {offsets = [0, 32], sizes = [8, 32], strides = [1, 1]} : vector<8x128xf32> to vector<8x32xf32>
    %253 = vector.extract_strided_slice %250 {offsets = [0, 64], sizes = [8, 32], strides = [1, 1]} : vector<8x128xf32> to vector<8x32xf32>
    %cst_64 = arith.constant 2.000000e+00 : f32
    %254 = vector.broadcast %cst_64 : f32 to vector<8x32xf32>
    %255 = arith.mulf %254, %253 : vector<8x32xf32>
    %cst_65 = arith.constant 1.000000e+00 : f32
    %256 = vector.broadcast %cst_65 : f32 to vector<8x32xf32>
    %257 = arith.subf %255, %256 : vector<8x32xf32>
    %258 = vector.extract_strided_slice %250 {offsets = [0, 96], sizes = [8, 32], strides = [1, 1]} : vector<8x128xf32> to vector<8x32xf32>
    %259 = arith.mulf %252, %212 : vector<8x32xf32>
    %260 = arith.mulf %251, %257 : vector<8x32xf32>
    %261 = arith.addf %259, %260 : vector<8x32xf32>
    %262 = math.tanh %261 : vector<8x32xf32>
    %263 = arith.mulf %258, %262 : vector<8x32xf32>
    %264 = vector.extract_strided_slice %18 {offsets = [0, 5], sizes = [8, 1], strides = [1, 1]} : vector<8x8xf32> to vector<8x1xf32>
    %265 = vector.broadcast %264 : vector<8x1xf32> to vector<8x128xf32>
    %266 = vector.broadcast %3 : vector<1x128xf32> to vector<8x128xf32>
    %267 = arith.mulf %265, %266 : vector<8x128xf32>
    %268 = vector.broadcast %4 : vector<1x128xf32> to vector<8x128xf32>
    %269 = arith.addf %267, %268 : vector<8x128xf32>
    %cst_66 = arith.constant dense<0.000000e+00> : vector<8x128xf32>
    %270 = tpu.matmul %240, %0, %cst_66 {dimension_numbers = #tpu.dot_dimension_numbers<[1], [0], [0], [1], [0, 0, 1, 1], [], []>} : vector<8x32xf32>, vector<32x128xf32>, vector<8x128xf32> -> vector<8x128xf32>
    %271 = arith.addf %269, %270 : vector<8x128xf32>
    %272 = arith.negf %271 : vector<8x128xf32>
    %273 = math.exp %272 : vector<8x128xf32>
    %cst_67 = arith.constant 1.000000e+00 : f32
    %274 = vector.broadcast %cst_67 : f32 to vector<8x128xf32>
    %275 = arith.addf %274, %273 : vector<8x128xf32>
    %276 = arith.divf %274, %275 : vector<8x128xf32>
    %277 = vector.extract_strided_slice %276 {offsets = [0, 0], sizes = [8, 32], strides = [1, 1]} : vector<8x128xf32> to vector<8x32xf32>
    %278 = vector.extract_strided_slice %276 {offsets = [0, 32], sizes = [8, 32], strides = [1, 1]} : vector<8x128xf32> to vector<8x32xf32>
    %279 = vector.extract_strided_slice %276 {offsets = [0, 64], sizes = [8, 32], strides = [1, 1]} : vector<8x128xf32> to vector<8x32xf32>
    %cst_68 = arith.constant 2.000000e+00 : f32
    %280 = vector.broadcast %cst_68 : f32 to vector<8x32xf32>
    %281 = arith.mulf %280, %279 : vector<8x32xf32>
    %cst_69 = arith.constant 1.000000e+00 : f32
    %282 = vector.broadcast %cst_69 : f32 to vector<8x32xf32>
    %283 = arith.subf %281, %282 : vector<8x32xf32>
    %284 = vector.extract_strided_slice %276 {offsets = [0, 96], sizes = [8, 32], strides = [1, 1]} : vector<8x128xf32> to vector<8x32xf32>
    %285 = arith.mulf %278, %238 : vector<8x32xf32>
    %286 = arith.mulf %277, %283 : vector<8x32xf32>
    %287 = arith.addf %285, %286 : vector<8x32xf32>
    %288 = math.tanh %287 : vector<8x32xf32>
    %289 = arith.mulf %284, %288 : vector<8x32xf32>
    %cst_70 = arith.constant dense<0.000000e+00> : vector<8x128xf32>
    %290 = tpu.matmul %263, %1, %cst_70 {dimension_numbers = #tpu.dot_dimension_numbers<[1], [0], [0], [1], [0, 0, 1, 1], [], []>} : vector<8x32xf32>, vector<32x128xf32>, vector<8x128xf32> -> vector<8x128xf32>
    %291 = vector.broadcast %5 : vector<1x128xf32> to vector<8x128xf32>
    %292 = arith.addf %290, %291 : vector<8x128xf32>
    %cst_71 = arith.constant dense<0.000000e+00> : vector<8x128xf32>
    %293 = tpu.matmul %289, %2, %cst_71 {dimension_numbers = #tpu.dot_dimension_numbers<[1], [0], [0], [1], [0, 0, 1, 1], [], []>} : vector<8x32xf32>, vector<32x128xf32>, vector<8x128xf32> -> vector<8x128xf32>
    %294 = arith.addf %293, %292 : vector<8x128xf32>
    %295 = arith.negf %294 : vector<8x128xf32>
    %296 = math.exp %295 : vector<8x128xf32>
    %cst_72 = arith.constant 1.000000e+00 : f32
    %297 = vector.broadcast %cst_72 : f32 to vector<8x128xf32>
    %298 = arith.addf %297, %296 : vector<8x128xf32>
    %299 = arith.divf %297, %298 : vector<8x128xf32>
    %300 = vector.extract_strided_slice %299 {offsets = [0, 0], sizes = [8, 32], strides = [1, 1]} : vector<8x128xf32> to vector<8x32xf32>
    %301 = vector.extract_strided_slice %299 {offsets = [0, 32], sizes = [8, 32], strides = [1, 1]} : vector<8x128xf32> to vector<8x32xf32>
    %302 = vector.extract_strided_slice %299 {offsets = [0, 64], sizes = [8, 32], strides = [1, 1]} : vector<8x128xf32> to vector<8x32xf32>
    %cst_73 = arith.constant 2.000000e+00 : f32
    %303 = vector.broadcast %cst_73 : f32 to vector<8x32xf32>
    %304 = arith.mulf %303, %302 : vector<8x32xf32>
    %cst_74 = arith.constant 1.000000e+00 : f32
    %305 = vector.broadcast %cst_74 : f32 to vector<8x32xf32>
    %306 = arith.subf %304, %305 : vector<8x32xf32>
    %307 = vector.extract_strided_slice %299 {offsets = [0, 96], sizes = [8, 32], strides = [1, 1]} : vector<8x128xf32> to vector<8x32xf32>
    %308 = arith.mulf %301, %261 : vector<8x32xf32>
    %309 = arith.mulf %300, %306 : vector<8x32xf32>
    %310 = arith.addf %308, %309 : vector<8x32xf32>
    %311 = math.tanh %310 : vector<8x32xf32>
    %312 = arith.mulf %307, %311 : vector<8x32xf32>
    %313 = vector.extract_strided_slice %18 {offsets = [0, 6], sizes = [8, 1], strides = [1, 1]} : vector<8x8xf32> to vector<8x1xf32>
    %314 = vector.broadcast %313 : vector<8x1xf32> to vector<8x128xf32>
    %315 = vector.broadcast %3 : vector<1x128xf32> to vector<8x128xf32>
    %316 = arith.mulf %314, %315 : vector<8x128xf32>
    %317 = vector.broadcast %4 : vector<1x128xf32> to vector<8x128xf32>
    %318 = arith.addf %316, %317 : vector<8x128xf32>
    %cst_75 = arith.constant dense<0.000000e+00> : vector<8x128xf32>
    %319 = tpu.matmul %289, %0, %cst_75 {dimension_numbers = #tpu.dot_dimension_numbers<[1], [0], [0], [1], [0, 0, 1, 1], [], []>} : vector<8x32xf32>, vector<32x128xf32>, vector<8x128xf32> -> vector<8x128xf32>
    %320 = arith.addf %318, %319 : vector<8x128xf32>
    %321 = arith.negf %320 : vector<8x128xf32>
    %322 = math.exp %321 : vector<8x128xf32>
    %cst_76 = arith.constant 1.000000e+00 : f32
    %323 = vector.broadcast %cst_76 : f32 to vector<8x128xf32>
    %324 = arith.addf %323, %322 : vector<8x128xf32>
    %325 = arith.divf %323, %324 : vector<8x128xf32>
    %326 = vector.extract_strided_slice %325 {offsets = [0, 0], sizes = [8, 32], strides = [1, 1]} : vector<8x128xf32> to vector<8x32xf32>
    %327 = vector.extract_strided_slice %325 {offsets = [0, 32], sizes = [8, 32], strides = [1, 1]} : vector<8x128xf32> to vector<8x32xf32>
    %328 = vector.extract_strided_slice %325 {offsets = [0, 64], sizes = [8, 32], strides = [1, 1]} : vector<8x128xf32> to vector<8x32xf32>
    %cst_77 = arith.constant 2.000000e+00 : f32
    %329 = vector.broadcast %cst_77 : f32 to vector<8x32xf32>
    %330 = arith.mulf %329, %328 : vector<8x32xf32>
    %cst_78 = arith.constant 1.000000e+00 : f32
    %331 = vector.broadcast %cst_78 : f32 to vector<8x32xf32>
    %332 = arith.subf %330, %331 : vector<8x32xf32>
    %333 = vector.extract_strided_slice %325 {offsets = [0, 96], sizes = [8, 32], strides = [1, 1]} : vector<8x128xf32> to vector<8x32xf32>
    %334 = arith.mulf %327, %287 : vector<8x32xf32>
    %335 = arith.mulf %326, %332 : vector<8x32xf32>
    %336 = arith.addf %334, %335 : vector<8x32xf32>
    %337 = math.tanh %336 : vector<8x32xf32>
    %338 = arith.mulf %333, %337 : vector<8x32xf32>
    %cst_79 = arith.constant dense<0.000000e+00> : vector<8x128xf32>
    %339 = tpu.matmul %312, %1, %cst_79 {dimension_numbers = #tpu.dot_dimension_numbers<[1], [0], [0], [1], [0, 0, 1, 1], [], []>} : vector<8x32xf32>, vector<32x128xf32>, vector<8x128xf32> -> vector<8x128xf32>
    %340 = vector.broadcast %5 : vector<1x128xf32> to vector<8x128xf32>
    %341 = arith.addf %339, %340 : vector<8x128xf32>
    %cst_80 = arith.constant dense<0.000000e+00> : vector<8x128xf32>
    %342 = tpu.matmul %338, %2, %cst_80 {dimension_numbers = #tpu.dot_dimension_numbers<[1], [0], [0], [1], [0, 0, 1, 1], [], []>} : vector<8x32xf32>, vector<32x128xf32>, vector<8x128xf32> -> vector<8x128xf32>
    %343 = arith.addf %342, %341 : vector<8x128xf32>
    %344 = arith.negf %343 : vector<8x128xf32>
    %345 = math.exp %344 : vector<8x128xf32>
    %cst_81 = arith.constant 1.000000e+00 : f32
    %346 = vector.broadcast %cst_81 : f32 to vector<8x128xf32>
    %347 = arith.addf %346, %345 : vector<8x128xf32>
    %348 = arith.divf %346, %347 : vector<8x128xf32>
    %349 = vector.extract_strided_slice %348 {offsets = [0, 0], sizes = [8, 32], strides = [1, 1]} : vector<8x128xf32> to vector<8x32xf32>
    %350 = vector.extract_strided_slice %348 {offsets = [0, 32], sizes = [8, 32], strides = [1, 1]} : vector<8x128xf32> to vector<8x32xf32>
    %351 = vector.extract_strided_slice %348 {offsets = [0, 64], sizes = [8, 32], strides = [1, 1]} : vector<8x128xf32> to vector<8x32xf32>
    %cst_82 = arith.constant 2.000000e+00 : f32
    %352 = vector.broadcast %cst_82 : f32 to vector<8x32xf32>
    %353 = arith.mulf %352, %351 : vector<8x32xf32>
    %cst_83 = arith.constant 1.000000e+00 : f32
    %354 = vector.broadcast %cst_83 : f32 to vector<8x32xf32>
    %355 = arith.subf %353, %354 : vector<8x32xf32>
    %356 = vector.extract_strided_slice %348 {offsets = [0, 96], sizes = [8, 32], strides = [1, 1]} : vector<8x128xf32> to vector<8x32xf32>
    %357 = arith.mulf %350, %310 : vector<8x32xf32>
    %358 = arith.mulf %349, %355 : vector<8x32xf32>
    %359 = arith.addf %357, %358 : vector<8x32xf32>
    %360 = math.tanh %359 : vector<8x32xf32>
    %361 = arith.mulf %356, %360 : vector<8x32xf32>
    %362 = vector.extract_strided_slice %18 {offsets = [0, 7], sizes = [8, 1], strides = [1, 1]} : vector<8x8xf32> to vector<8x1xf32>
    %363 = vector.broadcast %362 : vector<8x1xf32> to vector<8x128xf32>
    %364 = vector.broadcast %3 : vector<1x128xf32> to vector<8x128xf32>
    %365 = arith.mulf %363, %364 : vector<8x128xf32>
    %366 = vector.broadcast %4 : vector<1x128xf32> to vector<8x128xf32>
    %367 = arith.addf %365, %366 : vector<8x128xf32>
    %cst_84 = arith.constant dense<0.000000e+00> : vector<8x128xf32>
    %368 = tpu.matmul %338, %0, %cst_84 {dimension_numbers = #tpu.dot_dimension_numbers<[1], [0], [0], [1], [0, 0, 1, 1], [], []>} : vector<8x32xf32>, vector<32x128xf32>, vector<8x128xf32> -> vector<8x128xf32>
    %369 = arith.addf %367, %368 : vector<8x128xf32>
    %370 = arith.negf %369 : vector<8x128xf32>
    %371 = math.exp %370 : vector<8x128xf32>
    %cst_85 = arith.constant 1.000000e+00 : f32
    %372 = vector.broadcast %cst_85 : f32 to vector<8x128xf32>
    %373 = arith.addf %372, %371 : vector<8x128xf32>
    %374 = arith.divf %372, %373 : vector<8x128xf32>
    %375 = vector.extract_strided_slice %374 {offsets = [0, 0], sizes = [8, 32], strides = [1, 1]} : vector<8x128xf32> to vector<8x32xf32>
    %376 = vector.extract_strided_slice %374 {offsets = [0, 32], sizes = [8, 32], strides = [1, 1]} : vector<8x128xf32> to vector<8x32xf32>
    %377 = vector.extract_strided_slice %374 {offsets = [0, 64], sizes = [8, 32], strides = [1, 1]} : vector<8x128xf32> to vector<8x32xf32>
    %cst_86 = arith.constant 2.000000e+00 : f32
    %378 = vector.broadcast %cst_86 : f32 to vector<8x32xf32>
    %379 = arith.mulf %378, %377 : vector<8x32xf32>
    %cst_87 = arith.constant 1.000000e+00 : f32
    %380 = vector.broadcast %cst_87 : f32 to vector<8x32xf32>
    %381 = arith.subf %379, %380 : vector<8x32xf32>
    %382 = vector.extract_strided_slice %374 {offsets = [0, 96], sizes = [8, 32], strides = [1, 1]} : vector<8x128xf32> to vector<8x32xf32>
    %383 = arith.mulf %376, %336 : vector<8x32xf32>
    %384 = arith.mulf %375, %381 : vector<8x32xf32>
    %385 = arith.addf %383, %384 : vector<8x32xf32>
    %386 = math.tanh %385 : vector<8x32xf32>
    %387 = arith.mulf %382, %386 : vector<8x32xf32>
    %cst_88 = arith.constant dense<0.000000e+00> : vector<8x128xf32>
    %388 = tpu.matmul %361, %1, %cst_88 {dimension_numbers = #tpu.dot_dimension_numbers<[1], [0], [0], [1], [0, 0, 1, 1], [], []>} : vector<8x32xf32>, vector<32x128xf32>, vector<8x128xf32> -> vector<8x128xf32>
    %389 = vector.broadcast %5 : vector<1x128xf32> to vector<8x128xf32>
    %390 = arith.addf %388, %389 : vector<8x128xf32>
    %cst_89 = arith.constant dense<0.000000e+00> : vector<8x128xf32>
    %391 = tpu.matmul %387, %2, %cst_89 {dimension_numbers = #tpu.dot_dimension_numbers<[1], [0], [0], [1], [0, 0, 1, 1], [], []>} : vector<8x32xf32>, vector<32x128xf32>, vector<8x128xf32> -> vector<8x128xf32>
    %392 = arith.addf %391, %390 : vector<8x128xf32>
    %393 = arith.negf %392 : vector<8x128xf32>
    %394 = math.exp %393 : vector<8x128xf32>
    %cst_90 = arith.constant 1.000000e+00 : f32
    %395 = vector.broadcast %cst_90 : f32 to vector<8x128xf32>
    %396 = arith.addf %395, %394 : vector<8x128xf32>
    %397 = arith.divf %395, %396 : vector<8x128xf32>
    %398 = vector.extract_strided_slice %397 {offsets = [0, 0], sizes = [8, 32], strides = [1, 1]} : vector<8x128xf32> to vector<8x32xf32>
    %399 = vector.extract_strided_slice %397 {offsets = [0, 32], sizes = [8, 32], strides = [1, 1]} : vector<8x128xf32> to vector<8x32xf32>
    %400 = vector.extract_strided_slice %397 {offsets = [0, 64], sizes = [8, 32], strides = [1, 1]} : vector<8x128xf32> to vector<8x32xf32>
    %cst_91 = arith.constant 2.000000e+00 : f32
    %401 = vector.broadcast %cst_91 : f32 to vector<8x32xf32>
    %402 = arith.mulf %401, %400 : vector<8x32xf32>
    %cst_92 = arith.constant 1.000000e+00 : f32
    %403 = vector.broadcast %cst_92 : f32 to vector<8x32xf32>
    %404 = arith.subf %402, %403 : vector<8x32xf32>
    %405 = vector.extract_strided_slice %397 {offsets = [0, 96], sizes = [8, 32], strides = [1, 1]} : vector<8x128xf32> to vector<8x32xf32>
    %406 = arith.mulf %399, %359 : vector<8x32xf32>
    %407 = arith.mulf %398, %404 : vector<8x32xf32>
    %408 = arith.addf %406, %407 : vector<8x32xf32>
    %409 = math.tanh %408 : vector<8x32xf32>
    %410 = arith.mulf %405, %409 : vector<8x32xf32>
    %c0_93 = arith.constant 0 : index
    %c0_94 = arith.constant 0 : index
    %c0_95 = arith.constant 0 : index
    %411 = vector.load %arg6[%c0_93, %c0_94, %c0_95] : memref<4x8x32xf32, #tpu.memory_space<vmem>>, vector<1x8x32xf32>
    %412 = vector.shape_cast %411 : vector<1x8x32xf32> to vector<8x32xf32>
    %413 = vector.shape_cast %387 : vector<8x32xf32> to vector<1x8x32xf32>
    tpu.vector_store %arg6[%c0_93, %c0_94, %c0_95], %413 {strides = array<i32>} : memref<4x8x32xf32, #tpu.memory_space<vmem>>, vector<1x8x32xf32>,
    %c1_96 = arith.constant 1 : index
    %c0_97 = arith.constant 0 : index
    %c0_98 = arith.constant 0 : index
    %414 = vector.load %arg6[%c1_96, %c0_97, %c0_98] : memref<4x8x32xf32, #tpu.memory_space<vmem>>, vector<1x8x32xf32>
    %415 = vector.shape_cast %414 : vector<1x8x32xf32> to vector<8x32xf32>
    %416 = vector.shape_cast %385 : vector<8x32xf32> to vector<1x8x32xf32>
    tpu.vector_store %arg6[%c1_96, %c0_97, %c0_98], %416 {strides = array<i32>} : memref<4x8x32xf32, #tpu.memory_space<vmem>>, vector<1x8x32xf32>,
    %c2_99 = arith.constant 2 : index
    %c0_100 = arith.constant 0 : index
    %c0_101 = arith.constant 0 : index
    %417 = vector.load %arg6[%c2_99, %c0_100, %c0_101] : memref<4x8x32xf32, #tpu.memory_space<vmem>>, vector<1x8x32xf32>
    %418 = vector.shape_cast %417 : vector<1x8x32xf32> to vector<8x32xf32>
    %419 = vector.shape_cast %410 : vector<8x32xf32> to vector<1x8x32xf32>
    tpu.vector_store %arg6[%c2_99, %c0_100, %c0_101], %419 {strides = array<i32>} : memref<4x8x32xf32, #tpu.memory_space<vmem>>, vector<1x8x32xf32>,
    %c3_102 = arith.constant 3 : index
    %c0_103 = arith.constant 0 : index
    %c0_104 = arith.constant 0 : index
    %420 = vector.load %arg6[%c3_102, %c0_103, %c0_104] : memref<4x8x32xf32, #tpu.memory_space<vmem>>, vector<1x8x32xf32>
    %421 = vector.shape_cast %420 : vector<1x8x32xf32> to vector<8x32xf32>
    %422 = vector.shape_cast %408 : vector<8x32xf32> to vector<1x8x32xf32>
    tpu.vector_store %arg6[%c3_102, %c0_103, %c0_104], %422 {strides = array<i32>} : memref<4x8x32xf32, #tpu.memory_space<vmem>>, vector<1x8x32xf32>,
    %c0_i32_105 = arith.constant 0 : i32
    %423 = arith.cmpi eq, %arg0, %c0_i32_105 : i32
    %424 = arith.extui %423 : i1 to i32
    %c0_i32_106 = arith.constant 0 : i32
    %425 = arith.cmpi ne, %424, %c0_i32_106 : i32
    scf.if %425 {
      %426 = vector.broadcast %6 : vector<1x32xf32> to vector<8x32xf32>
      %427 = arith.mulf %410, %426 : vector<8x32xf32>
      %cst_107 = arith.constant dense<0.000000e+00> : vector<8xf32>
      %428 = vector.multi_reduction <add>, %427, %cst_107 [1] : vector<8x32xf32> to vector<8xf32>
      %429 = vector.shape_cast %428 : vector<8xf32> to vector<8x1xf32>
      %c0_108 = arith.constant 0 : index
      %430 = memref.load %arg4[%c0_108] : memref<1xf32, #tpu.memory_space<smem>>
      %431 = vector.broadcast %430 : f32 to vector<8x1xf32>
      %432 = arith.addf %429, %431 : vector<8x1xf32>
      %c0_109 = arith.constant 0 : index
      %c0_110 = arith.constant 0 : index
      %433 = vector.load %arg5[%c0_109, %c0_110] : memref<8x1xf32, #tpu.memory_space<vmem>>, vector<8x1xf32>
      tpu.vector_store %arg5[%c0_109, %c0_110], %432 {strides = array<i32>} : memref<8x1xf32, #tpu.memory_space<vmem>>, vector<8x1xf32>,
    } else {
    }
    return
  }
  func.func @transform_0(%arg0: i32) -> (i32, i32) {
    %c0_i32 = arith.constant 0 : i32
    %c0_i32_0 = arith.constant 0 : i32
    return %c0_i32, %arg0 : i32, i32
  }
  func.func @transform_1(%arg0: i32) -> (i32, i32) {
    %c0_i32 = arith.constant 0 : i32
    %c0_i32_0 = arith.constant 0 : i32
    %c0_i32_1 = arith.constant 0 : i32
    return %c0_i32, %c0_i32_0 : i32, i32
  }
  func.func @transform_2(%arg0: i32) -> (i32, i32) {
    %c0_i32 = arith.constant 0 : i32
    %c0_i32_0 = arith.constant 0 : i32
    %c0_i32_1 = arith.constant 0 : i32
    return %c0_i32, %c0_i32_0 : i32, i32
  }
  func.func @transform_3(%arg0: i32) -> i32 {
    %c0_i32 = arith.constant 0 : i32
    %c0_i32_0 = arith.constant 0 : i32
    return %c0_i32 : i32
  }
  func.func @transform_4(%arg0: i32) -> (i32, i32) {
    %c0_i32 = arith.constant 0 : i32
    %c0_i32_0 = arith.constant 0 : i32
    %c0_i32_1 = arith.constant 0 : i32
    return %c0_i32, %c0_i32_0 : i32, i32
  }
}

</mosaic_0001>

<bundles_post_ra>
// kernel: tvl_predictor_forward.1
= control target key start
LH: loop header
LB: loop body
LE: loop exit
PB: predicated region body
PF: predicated region fallthrough
CT: control target
= control target key end

     0   :  { %10 = vsyncpa [#allocation5], 0  ;;  %s3115_s15 = smov [#allocation4]   ;;  %s3546_s0 = inlined_call_operand.vmem [shape: f32[8,8], index: 0, kind: input, shape index: {}]   ;;  %s3547_s1 = inlined_call_operand.hbm [shape: f32[32,384], index: 1, kind: input, shape index: {}]   ;;  %s3548_s2 = inlined_call_operand.vmem [shape: f32[1,416], index: 2, kind: input, shape index: {}]   ;;  %s3549_s3 = inlined_call_operand.<no memory space> [shape: f32[1], index: 3, kind: input, shape index: {}]   ;;  %s3550_s4 = inlined_call_operand.vmem [shape: f32[8,1], index: 4, kind: output, shape index: {}]  }
   0x1   :  { %s18_s16 = sshll.u32 %s3115_s15, 4  ;;  %s3091_s19 = scalar_lea.hbm %s3547_s1, 1536  ;;  %s19_s16 = int_to_ptr.vmem [resolvable:$true] %s18_s16 }
   0x2   :  { %p3092_p0 = scmp.ne.s32.totalorder %s3547_s1, %s3091_s19  ;;  %p3095_p1 = scmp.lt.u32.totalorder %s3091_s19, %s3547_s1 }
   0x4   :  { %p3097_p2 = pnand %p3095_p1, %p3092_p0 }
   0x6   :  { %3100 = shalt.err (!%p3097_p2)
}
   0x7   :  { %s3101_s24 = scalar_lea.vmem %s19_s16, 1536  ;;  %p3106_p4 = scmp.lt.s32.totalorder %s19_s16, %s19_s16 }
   0x8   :  { %p3102_p3 = scmp.ne.s32.totalorder %s19_s16, %s3101_s24  ;;  %p3107_p5 = scmp.lt.s32.totalorder %s3101_s24, %s3101_s24 }
   0xa   :  { %p3108_p6 = por %p3107_p5, %p3106_p4 }
   0xc   :  { %p3109_p7 = pnand %p3108_p6, %p3102_p3 }
   0xe   :  { %3112 = shalt.err (!%p3109_p7)
}
   0xf   :  { %s3116_s25 = smov 384   ;;  %s3117_s26 = smov 24  }
  0x10   :  { %24 = dma.hbm_to_vmem [thread:$0]  %s3547_s1, 1536, %s19_s16, [#allocation5], %s3116_s25, %s3116_s25, %s3117_s26  }
  0x11   :  { %3113 = dma.done.wait [#allocation5], 1536  }
  0x12   :  { %3114 = vsyncadd [#allocation5], 4294965760  ;;  %vm52_vm0 = vcmask 261120   ;;  %v3118_v0 = vmov 0.0|0.0   ;;  %vm3119_vm1 = vmmov 0   ;;  %v3120_v1 = vmov 0.0  }
  0x13   :  { %2800 = vmatprep.subr.bf16.mxu1 %v3118_v0  ;;  %2544 = vmatprep.mubr.msk.f32.mxu1 %vm3119_vm1, %v3120_v1  ;;  %53 = vst.msk [vmem:[#allocation2] sm:$0xff] %vm52_vm0, %v3120_v1  ;;  %54 = vst.msk [vmem:[#allocation2 + $0x8] sm:$0xff] %vm52_vm0, %v3120_v1  ;;  %v3121_v2 = vmov 0   ;;  %v32_v3 = vld [vmem:[#allocation4] sm:$0xff]  ;;  %v33_v4 = vld [vmem:[#allocation4 + $0x18] sm:$0xff]  ;;  %s3122_s30 = smov 32  }
  0x14   :  { %55 = vst.msk [vmem:[#allocation2 + $0x10] sm:$0xff] %vm52_vm0, %v3120_v1  ;;  %56 = vst.msk [vmem:[#allocation2 + $0x18] sm:$0xff] %vm52_vm0, %v3120_v1  ;;  %2985 = vset.pattern.permute.xlu0 %v3121_v2  ;;  %2818 = vmatprep.subr.bf16.mxu0 %v3118_v0  ;;  %v34_v5 = vld [vmem:[#allocation4 + $0x30] sm:$0xff]  ;;  %v3183_v6 = vpack.c.bf16 %v33_v4, %v32_v3  ;;  %v35_v7 = vld [vmem:[#allocation4 + $0x48] sm:$0xff]  ;;  %s3123_s9 = smov 64   ;;  %v3124_v46 = vmov 1  }
  0x15   :  { %2577 = vmatprep.mubr.msk.f32.mxu0 %vm3119_vm1, %v3120_v1  ;;  %v3188_v8 = vld [vmem:[%s3546_s0] sm:$0xff]  ;;  %v3192_v10 = vpack.c.bf16 %v35_v7, %v34_v5  ;;  %v36_v32 = vld [vmem:[#allocation4 + $0x8] sm:$0xff]  ;;  %v38_v34 = vld [vmem:[#allocation4 + $0x38] sm:$0xff]  ;;  %s3131_s17 = smov 96   ;;  %vm2349_vm2 = vcmask 7168  }
  0x16   :  { %67 = vperm.xlu0 %2985, %v3188_v8   ;;  %2802 = vmatpush3.bf16.msra.mxu1 %v3183_v6  ;;  %v3208_v13 = vld [vmem:[%s3548_s2] ss:$0 sm:$0xff]  ;;  %v3214_v15 = vld [vmem:[%s3548_s2 + $0x1] ss:$0 sm:$0xff]  ;;  %v39_v36 = vld [vmem:[#allocation4 + $0x50] sm:$0xff] }
  0x17   :  { %2803 = vmatprep.subr.bf16.mxu1 %v3118_v0  ;;  %2820 = vmatpush3.bf16.msra.mxu0 %v3183_v6  ;;  %v37_v33 = vld [vmem:[#allocation4 + $0x20] sm:$0xff]  ;;  %v3225_v37 = vpack.c.bf16 %v39_v36, %v38_v34  ;;  %v40_v38 = vld [vmem:[#allocation4 + $0x10] sm:$0xff]  ;;  %v41_v39 = vld [vmem:[#allocation4 + $0x28] sm:$0xff] }
  0x18   :  { %2821 = vmatprep.subr.bf16.mxu0 %v3118_v0  ;;  %v3222_v35 = vpack.c.bf16 %v37_v33, %v36_v32  ;;  %v3229_v41 = vpack.c.bf16 %v41_v39, %v40_v38  ;;  %v42_v42 = vld [vmem:[#allocation4 + $0x40] sm:$0xff]  ;;  %v43_v43 = vld [vmem:[#allocation4 + $0x58] sm:$0xff] }
  0x19   :  { %v3235_v45 = vpack.c.bf16 %v43_v43, %v42_v42  ;;  %v3264_v54 = vld [vmem:[%s3548_s2 + $0x2] ss:$0 sm:$0xff] }
  0x1a   :  { %v59_v9 = vld [vmem:[#allocation2 + $0x8] sm:$0xff]  ;;  %2805 = vmatpush3.bf16.msra.mxu1 %v3192_v10  ;;  %v57_v11 = vld [vmem:[#allocation2] sm:$0xff]  ;;  %2986 = vset.pattern.permute.xlu0 %v3124_v46 }
  0x1b   :  { %168 = vrot.lane.b32.xlu1 %v59_v9, %s3122_s30  ;;  %2806 = vmatprep.subr.bf16.mxu1 %v3118_v0  ;;  %v61_v40 = vld [vmem:[#allocation2 + $0x10] sm:$0xff]  ;;  %v63_v47 = vld [vmem:[#allocation2 + $0x18] sm:$0xff] }
  0x1c   :  { %2823 = vmatpush3.bf16.msra.mxu0 %v3192_v10 }
  0x1d   :  { %2824 = vmatprep.subr.bf16.mxu0 %v3118_v0  ;;  %2545 = vmatmul.mubr.msk.f32.vlgmr.msra.gmra.mrb[0].mxu1 %vm52_vm0, %v57_v11 }
  0x1e   :  { %2555 = vmatprep.mubr.msk.f32.mxu1 %vm3119_vm1, %v3120_v1  ;;  %2808 = vmatpush3.bf16.msra.mxu1 %v3222_v35 }
  0x1f   :  { %2809 = vmatprep.subr.bf16.mxu1 %v3118_v0 }
  0x22   :  { %2811 = vmatpush3.bf16.msra.mxu1 %v3225_v37 }
  0x23   :  { %2812 = vmatprep.subr.bf16.mxu1 %v3118_v0 }
  0x25   :  { %2556 = vmatmul.mubr.msk.f32.vlgmr.msra.gmra.mrb[2].mxu1 %vm52_vm0, %v61_v40 }
  0x26   :  { %2814 = vmatpush3.bf16.msra.mxu1 %v3229_v41  ;;  %2566 = vmatprep.mubr.msk.f32.mxu1 %vm3119_vm1, %v3120_v1 }
  0x27   :  { %2815 = vmatprep.subr.bf16.mxu1 %v3118_v0 }
  0x2a   :  { %2817 = vmatpush3.bf16.msra.mxu1 %v3235_v45 }
  0x2b   :  { %2836 = vmatprep.subr.bf16.mxu1 %v3118_v0 }
  0x8d   :  { %v169_v28 = vpop.permute.xlu1 %168 }
  0x95   :  { %v68_v12 = vpop.permute.xlu0 %67 }
  0x96   :  { %v76_v14 = vmul.f32 %v3208_v13, %v68_v12 }
  0x98   :  { %v83_v16 = vadd.f32 %v3214_v15, %v76_v14 }
  0xf0   :  { %v154_v17 = vpop.f32.mrb[0].mxu1 }
  0xf1   :  { %v158_v18 = vadd.f32 %v154_v17, %v83_v16  ;;  %v2546_v19 = vpop.f32.mrb[1].mxu1 }
  0xf3   :  { %v2359_v20 = vmul.f32 -1.442695, %v158_v18 }
  0xf5   :  { %2993 = vpow2.f32 %v2359_v20 }
  0xff   :  { %v2994_v21 = vpop.eup %2993 }
 0x100   :  { %v162_v22 = vadd.f32 1.0, %v2994_v21 }
 0x102   :  { %2995 = vrcp.f32 %v162_v22 }
 0x10c   :  { %v2996_v23 = vpop.eup %2995 }
 0x10d   :  { %v165_v24 = vmul.f32 2.0, %v2996_v23  ;;  %v171_v29 = vmul.f32 %v2996_v23, %v169_v28 }
 0x10f   :  { %v2360_v25 = vadd.f32 -1.0, %v165_v24 }
 0x111   :  { %173 = vrot.lane.b32.xlu0 %v2360_v25, %s3123_s9 }
 0x183   :  { %v174_v26 = vpop.permute.xlu0 %173 }
 0x184   :  { %v176_v27 = vmul.f32 %v2996_v23, %v174_v26 }
 0x186   :  { %178 = vrot.lane.b32.xlu1 %v176_v27, %s3122_s30 }
 0x1f8   :  { %v179_v30 = vpop.permute.xlu1 %178 }
 0x1f9   :  { %v3219_v31 = vadd.f32 %v179_v30, %v171_v29  ;;  %v3125_v29 = vmov 2  }
 0x1fa   :  { %2987 = vset.pattern.permute.xlu1 %v3125_v29 }
 0x1fb   :  { %2997 = vtanh.f32 %v3219_v31 }
 0x205   :  { %v2998_v44 = vpop.eup %2997 }
 0x206   :  { %184 = vrot.lane.b32.xlu0 %v2998_v44, %s3123_s9 }
 0x20a   :  { %372 = vperm.xlu0 %2986, %v3188_v8  }
 0x20e   :  { %351 = vrot.lane.b32.xlu0 %v63_v47, %s3122_s30 }
 0x278   :  { %v185_v48 = vpop.permute.xlu0 %184 }
 0x279   :  { %v187_v49 = vmul.f32 %v2996_v23, %v185_v48 }
 0x27b   :  { %268 = vrot.lane.b32.xlu1 %v187_v49, %s3122_s30 }
 0x289   :  { %v373_v51 = vpop.permute.xlu0 %372 }
 0x28a   :  { %v375_v52 = vmul.f32 %v3208_v13, %v373_v51 }
 0x28c   :  { %v376_v53 = vadd.f32 %v3214_v15, %v375_v52 }
 0x28d   :  { %v352_v20 = vpop.permute.xlu0 %351 }
 0x2ed   :  { %v269_v50 = vpop.permute.xlu1 %268 }
 0x2ee   :  { %2567 = vmatmul.mubr.msk.f32.vlgmr.msra.gmra.mrb[2].mxu1 %vm52_vm0, %v269_v50  ;;  %2578 = vmatmul.mubr.msk.f32.vlgmr.msra.gmra.mrb[0].mxu0 %vm52_vm0, %v269_v50 }
 0x2ef   :  { %2826 = vmatpush3.bf16.msra.mxu0 %v3222_v35  ;;  %2838 = vmatpush3.bf16.msra.mxu1 %v3183_v6 }
 0x2f0   :  { %2827 = vmatprep.subr.bf16.mxu0 %v3118_v0  ;;  %2588 = vmatprep.mubr.msk.f32.mxu0 %vm3119_vm1, %v3120_v1 }
 0x2f1   :  { %2839 = vmatprep.subr.bf16.mxu1 %v3118_v0  ;;  %2610 = vmatprep.mubr.msk.f32.mxu1 %vm3119_vm1, %v3120_v1 }
 0x2f3   :  { %2829 = vmatpush3.bf16.msra.mxu0 %v3225_v37  ;;  %2841 = vmatpush3.bf16.msra.mxu1 %v3192_v10 }
 0x2f4   :  { %2830 = vmatprep.subr.bf16.mxu0 %v3118_v0  ;;  %2842 = vmatprep.subr.bf16.mxu1 %v3118_v0 }
 0x3c1   :  { %v338_v55 = vpop.f32.mrb[2].mxu1  ;;  %v443_v56 = vpop.f32.mrb[0].mxu0 }
 0x3c2   :  { %v2944_v57 = vadd.f32 %v3264_v54, %v338_v55  ;;  %v447_v58 = vadd.f32 %v443_v56, %v376_v53  ;;  %v2568_v59 = vpop.f32.mrb[3].mxu1  ;;  %v2579_v60 = vpop.f32.mrb[1].mxu0 }
 0x3c4   :  { %v2364_v61 = vmul.f32 -1.442695, %v2944_v57  ;;  %v2367_v62 = vmul.f32 -1.442695, %v447_v58 }
 0x3c6   :  { %2999 = vpow2.f32 %v2364_v61 }
 0x3c7   :  { %3001 = vpow2.f32 %v2367_v62 }
 0x3d0   :  { %v3000_v63 = vpop.eup %2999 }
 0x3d1   :  { %v3002_v2 = vpop.eup %3001  ;;  %v345_v3 = vadd.f32 1.0, %v3000_v63 }
 0x3d2   :  { %v451_v4 = vadd.f32 1.0, %v3002_v2 }
 0x3d3   :  { %3003 = vrcp.f32 %v345_v3 }
 0x3d4   :  { %3005 = vrcp.f32 %v451_v4 }
 0x3dd   :  { %v3004_v5 = vpop.eup %3003 }
 0x3de   :  { %v3006_v7 = vpop.eup %3005  ;;  %v348_v9 = vmul.f32 2.0, %v3004_v5  ;;  %v354_v21 = vmul.f32 %v3004_v5, %v352_v20 }
 0x3df   :  { %v454_v12 = vmul.f32 2.0, %v3006_v7  ;;  %v456_v24 = vmul.f32 %v3006_v7, %v3219_v31 }
 0x3e0   :  { %v2365_v11 = vadd.f32 -1.0, %v348_v9 }
 0x3e1   :  { %v2368_v14 = vadd.f32 -1.0, %v454_v12 }
 0x3e2   :  { %356 = vrot.lane.b32.xlu1 %v2365_v11, %s3123_s9 }
 0x3e6   :  { %458 = vrot.lane.b32.xlu1 %v2368_v14, %s3123_s9 }
 0x454   :  { %v357_v16 = vpop.permute.xlu1 %356 }
 0x455   :  { %v359_v17 = vmul.f32 %v3004_v5, %v357_v16 }
 0x457   :  { %361 = vrot.lane.b32.xlu1 %v359_v17, %s3122_s30 }
 0x458   :  { %v459_v18 = vpop.permute.xlu1 %458 }
 0x459   :  { %v461_v19 = vmul.f32 %v3006_v7, %v459_v18 }
 0x45b   :  { %463 = vrot.lane.b32.xlu0 %v461_v19, %s3122_s30  ;;  %v3126_v19 = vmov 3  }
 0x45c   :  { %2988 = vset.pattern.permute.xlu0 %v3126_v19 }
 0x4c9   :  { %v362_v22 = vpop.permute.xlu1 %361 }
 0x4ca   :  { %v3271_v23 = vadd.f32 %v362_v22, %v354_v21 }
 0x4cc   :  { %3007 = vtanh.f32 %v3271_v23 }
 0x4cd   :  { %v464_v25 = vpop.permute.xlu0 %463 }
 0x4ce   :  { %v3275_v26 = vadd.f32 %v464_v25, %v456_v24 }
 0x4d0   :  { %3009 = vtanh.f32 %v3275_v26 }
 0x4d6   :  { %v3008_v27 = vpop.eup %3007 }
 0x4d7   :  { %367 = vrot.lane.b32.xlu1 %v3008_v27, %s3123_s9 }
 0x4da   :  { %v3010_v28 = vpop.eup %3009 }
 0x4db   :  { %469 = vrot.lane.b32.xlu0 %v3010_v28, %s3123_s9 }
 0x549   :  { %v368_v30 = vpop.permute.xlu1 %367 }
 0x54a   :  { %v370_v32 = vmul.f32 %v3004_v5, %v368_v30 }
 0x54c   :  { %474 = vrot.lane.b32.xlu1 %v370_v32, %s3122_s30 }
 0x54d   :  { %v470_v33 = vpop.permute.xlu0 %469 }
 0x54e   :  { %v472_v34 = vmul.f32 %v3006_v7, %v470_v33 }
 0x550   :  { %549 = vrot.lane.b32.xlu0 %v472_v34, %s3122_s30  ;;  %649 = vperm.xlu1 %2987, %v3188_v8  }
 0x5be   :  { %v475_v31 = vpop.permute.xlu1 %474 }
 0x5bf   :  { %2589 = vmatmul.mubr.msk.f32.vlgmr.msra.gmra.mrb[2].mxu0 %vm52_vm0, %v475_v31 }
 0x5c0   :  { %2832 = vmatpush3.bf16.msra.mxu0 %v3229_v41  ;;  %2599 = vmatprep.mubr.msk.f32.mxu0 %vm3119_vm1, %v3120_v1 }
 0x5c1   :  { %2833 = vmatprep.subr.bf16.mxu0 %v3118_v0 }
 0x5c2   :  { %v550_v36 = vpop.permute.xlu0 %549 }
 0x5c3   :  { %2611 = vmatmul.mubr.msk.f32.vlgmr.msra.gmra.mrb[4].mxu1 %vm52_vm0, %v550_v36 }
 0x5c4   :  { %2835 = vmatpush3.bf16.msra.mxu0 %v3235_v45  ;;  %2844 = vmatpush3.bf16.msra.mxu1 %v3222_v35 }
 0x5c5   :  { %2854 = vmatprep.subr.bf16.mxu0 %v3118_v0  ;;  %2845 = vmatprep.subr.bf16.mxu1 %v3118_v0 }
 0x5c6   :  { %2621 = vmatprep.mubr.msk.f32.mxu1 %vm3119_vm1, %v3120_v1 }
 0x5c7   :  { %2600 = vmatmul.mubr.msk.f32.vlgmr.msra.gmra.mrb[2].mxu0 %vm52_vm0, %v550_v36 }
 0x5c8   :  { %2856 = vmatpush3.bf16.msra.mxu0 %v3183_v6  ;;  %2643 = vmatprep.mubr.msk.f32.mxu0 %vm3119_vm1, %v3120_v1 }
 0x5c9   :  { %2857 = vmatprep.subr.bf16.mxu0 %v3118_v0  ;;  %2847 = vmatpush3.bf16.msra.mxu1 %v3225_v37 }
 0x5ca   :  { %2848 = vmatprep.subr.bf16.mxu1 %v3118_v0 }
 0x5cc   :  { %2859 = vmatpush3.bf16.msra.mxu0 %v3192_v10 }
 0x5cd   :  { %2860 = vmatprep.subr.bf16.mxu0 %v3118_v0 }
 0x5cf   :  { %v650_v38 = vpop.permute.xlu1 %649 }
 0x5d0   :  { %v652_v39 = vmul.f32 %v3208_v13, %v650_v38 }
 0x5d2   :  { %v653_v40 = vadd.f32 %v3214_v15, %v652_v39 }
 0x696   :  { %v720_v42 = vpop.f32.mrb[4].mxu1 }
 0x697   :  { %v724_v43 = vadd.f32 %v720_v42, %v653_v40  ;;  %v2612_v44 = vpop.f32.mrb[5].mxu1 }
 0x699   :  { %v2374_v46 = vmul.f32 -1.442695, %v724_v43 }
 0x69a   :  { %v619_v47 = vpop.f32.mrb[2].mxu0 }
 0x69b   :  { %3011 = vpow2.f32 %v2374_v46  ;;  %v2945_v48 = vadd.f32 %v3264_v54, %v619_v47  ;;  %v2601_v49 = vpop.f32.mrb[3].mxu0 }
 0x69d   :  { %v2371_v50 = vmul.f32 -1.442695, %v2945_v48 }
 0x69f   :  { %3013 = vpow2.f32 %v2371_v50 }
 0x6a5   :  { %v3012_v51 = vpop.eup %3011 }
 0x6a6   :  { %v728_v52 = vadd.f32 1.0, %v3012_v51 }
 0x6a8   :  { %3015 = vrcp.f32 %v728_v52 }
 0x6a9   :  { %v3014_v53 = vpop.eup %3013 }
 0x6aa   :  { %v626_v55 = vadd.f32 1.0, %v3014_v53 }
 0x6ac   :  { %3017 = vrcp.f32 %v626_v55 }
 0x6b2   :  { %v3016_v56 = vpop.eup %3015 }
 0x6b3   :  { %v731_v57 = vmul.f32 2.0, %v3016_v56  ;;  %v733_v4 = vmul.f32 %v3016_v56, %v3275_v26 }
 0x6b5   :  { %v2375_v58 = vadd.f32 -1.0, %v731_v57 }
 0x6b6   :  { %v3018_v59 = vpop.eup %3017 }
 0x6b7   :  { %735 = vrot.lane.b32.xlu1 %v2375_v58, %s3123_s9  ;;  %v629_v60 = vmul.f32 2.0, %v3018_v59  ;;  %v631_v9 = vmul.f32 %v3018_v59, %v3271_v23 }
 0x6b9   :  { %v2372_v61 = vadd.f32 -1.0, %v629_v60 }
 0x6bb   :  { %633 = vrot.lane.b32.xlu0 %v2372_v61, %s3123_s9 }
 0x729   :  { %v736_v62 = vpop.permute.xlu1 %735 }
 0x72a   :  { %v738_v63 = vmul.f32 %v3016_v56, %v736_v62  ;;  %v3127_v62 = vmov 4  }
 0x72c   :  { %740 = vrot.lane.b32.xlu1 %v738_v63, %s3122_s30 }
 0x72d   :  { %v634_v2 = vpop.permute.xlu0 %633 }
 0x72e   :  { %v636_v3 = vmul.f32 %v3018_v59, %v634_v2 }
 0x730   :  { %638 = vrot.lane.b32.xlu0 %v636_v3, %s3122_s30 }
 0x79e   :  { %v741_v5 = vpop.permute.xlu1 %740 }
 0x79f   :  { %v3312_v7 = vadd.f32 %v741_v5, %v733_v4 }
 0x7a1   :  { %3019 = vtanh.f32 %v3312_v7 }
 0x7a2   :  { %v639_v11 = vpop.permute.xlu0 %638 }
 0x7a3   :  { %v3316_v12 = vadd.f32 %v639_v11, %v631_v9 }
 0x7a5   :  { %3021 = vtanh.f32 %v3316_v12 }
 0x7ab   :  { %v3020_v14 = vpop.eup %3019 }
 0x7ac   :  { %746 = vrot.lane.b32.xlu1 %v3020_v14, %s3123_s9 }
 0x7af   :  { %v3022_v16 = vpop.eup %3021 }
 0x7b0   :  { %644 = vrot.lane.b32.xlu0 %v3022_v16, %s3123_s9 }
 0x81e   :  { %v747_v17 = vpop.permute.xlu1 %746 }
 0x81f   :  { %v749_v18 = vmul.f32 %v3016_v56, %v747_v17 }
 0x821   :  { %826 = vrot.lane.b32.xlu1 %v749_v18, %s3122_s30 }
 0x822   :  { %v645_v20 = vpop.permute.xlu0 %644 }
 0x823   :  { %v647_v21 = vmul.f32 %v3018_v59, %v645_v20 }
 0x825   :  { %751 = vrot.lane.b32.xlu0 %v647_v21, %s3122_s30 }
 0x829   :  { %926 = vperm.xlu0 %2988, %v3188_v8  }
 0x82d   :  { %2989 = vset.pattern.permute.xlu0 %v3127_v62 }
 0x893   :  { %v827_v22 = vpop.permute.xlu1 %826 }
 0x894   :  { %2644 = vmatmul.mubr.msk.f32.vlgmr.msra.gmra.mrb[4].mxu0 %vm52_vm0, %v827_v22 }
 0x895   :  { %2862 = vmatpush3.bf16.msra.mxu0 %v3222_v35  ;;  %2654 = vmatprep.mubr.msk.f32.mxu0 %vm3119_vm1, %v3120_v1 }
 0x896   :  { %2863 = vmatprep.subr.bf16.mxu0 %v3118_v0 }
 0x897   :  { %v752_v23 = vpop.permute.xlu0 %751 }
 0x898   :  { %2622 = vmatmul.mubr.msk.f32.vlgmr.msra.gmra.mrb[6].mxu1 %vm52_vm0, %v752_v23 }
 0x899   :  { %2850 = vmatpush3.bf16.msra.mxu1 %v3229_v41  ;;  %2632 = vmatprep.mubr.msk.f32.mxu1 %vm3119_vm1, %v3120_v1 }
 0x89a   :  { %2851 = vmatprep.subr.bf16.mxu1 %v3118_v0  ;;  %2865 = vmatpush3.bf16.msra.mxu0 %v3225_v37 }
 0x89b   :  { %2866 = vmatprep.subr.bf16.mxu0 %v3118_v0 }
 0x89d   :  { %2853 = vmatpush3.bf16.msra.mxu1 %v3235_v45 }
 0x89e   :  { %2872 = vmatprep.subr.bf16.mxu1 %v3118_v0 }
 0x8a0   :  { %2633 = vmatmul.mubr.msk.f32.vlgmr.msra.gmra.mrb[6].mxu1 %vm52_vm0, %v827_v22 }
 0x8a1   :  { %2874 = vmatpush3.bf16.msra.mxu1 %v3183_v6  ;;  %2676 = vmatprep.mubr.msk.f32.mxu1 %vm3119_vm1, %v3120_v1 }
 0x8a2   :  { %2875 = vmatprep.subr.bf16.mxu1 %v3118_v0 }
 0x8a5   :  { %2877 = vmatpush3.bf16.msra.mxu1 %v3192_v10 }
 0x8a6   :  { %2878 = vmatprep.subr.bf16.mxu1 %v3118_v0 }
 0x8a8   :  { %v927_v24 = vpop.permute.xlu0 %926 }
 0x8a9   :  { %v929_v25 = vmul.f32 %v3208_v13, %v927_v24 }
 0x8ab   :  { %v930_v26 = vadd.f32 %v3214_v15, %v929_v25 }
 0x967   :  { %v997_v27 = vpop.f32.mrb[4].mxu0 }
 0x968   :  { %v2645_v28 = vpop.f32.mrb[5].mxu0  ;;  %v1001_v29 = vadd.f32 %v997_v27, %v930_v26 }
 0x96a   :  { %v2381_v30 = vmul.f32 -1.442695, %v1001_v29 }
 0x96c   :  { %3023 = vpow2.f32 %v2381_v30 }
 0x973   :  { %v896_v32 = vpop.f32.mrb[6].mxu1 }
 0x974   :  { %v2946_v33 = vadd.f32 %v3264_v54, %v896_v32  ;;  %v2634_v34 = vpop.f32.mrb[7].mxu1 }
 0x976   :  { %v2378_v31 = vmul.f32 -1.442695, %v2946_v33  ;;  %v3024_v36 = vpop.eup %3023 }
 0x977   :  { %v1005_v38 = vadd.f32 1.0, %v3024_v36 }
 0x978   :  { %3025 = vpow2.f32 %v2378_v31 }
 0x979   :  { %3027 = vrcp.f32 %v1005_v38 }
 0x982   :  { %v3026_v39 = vpop.eup %3025 }
 0x983   :  { %v903_v40 = vadd.f32 1.0, %v3026_v39  ;;  %v3028_v42 = vpop.eup %3027 }
 0x984   :  { %v1008_v47 = vmul.f32 2.0, %v3028_v42  ;;  %v1010_v57 = vmul.f32 %v3028_v42, %v3312_v7 }
 0x985   :  { %3029 = vrcp.f32 %v903_v40 }
 0x986   :  { %v2382_v48 = vadd.f32 -1.0, %v1008_v47 }
 0x98f   :  { %v3030_v43 = vpop.eup %3029 }
 0x990   :  { %v906_v44 = vmul.f32 2.0, %v3030_v43  ;;  %v908_v53 = vmul.f32 %v3030_v43, %v3316_v12 }
 0x992   :  { %v2379_v46 = vadd.f32 -1.0, %v906_v44 }
 0x994   :  { %910 = vrot.lane.b32.xlu1 %v2379_v46, %s3123_s9 }
 0x998   :  { %1012 = vrot.lane.b32.xlu1 %v2382_v48, %s3123_s9 }
 0xa06   :  { %v911_v49 = vpop.permute.xlu1 %910 }
 0xa07   :  { %v913_v50 = vmul.f32 %v3030_v43, %v911_v49  ;;  %v3128_v49 = vmov 5  }
 0xa09   :  { %915 = vrot.lane.b32.xlu0 %v913_v50, %s3122_s30 }
 0xa0a   :  { %v1013_v51 = vpop.permute.xlu1 %1012 }
 0xa0b   :  { %v1015_v52 = vmul.f32 %v3028_v42, %v1013_v51 }
 0xa0d   :  { %1017 = vrot.lane.b32.xlu1 %v1015_v52, %s3122_s30 }
 0xa7b   :  { %v916_v55 = vpop.permute.xlu0 %915 }
 0xa7c   :  { %v3353_v56 = vadd.f32 %v916_v55, %v908_v53 }
 0xa7e   :  { %3031 = vtanh.f32 %v3353_v56 }
 0xa7f   :  { %v1018_v58 = vpop.permute.xlu1 %1017 }
 0xa80   :  { %v3357_v59 = vadd.f32 %v1018_v58, %v1010_v57 }
 0xa82   :  { %3033 = vtanh.f32 %v3357_v59 }
 0xa88   :  { %v3032_v60 = vpop.eup %3031 }
 0xa89   :  { %921 = vrot.lane.b32.xlu0 %v3032_v60, %s3123_s9 }
 0xa8c   :  { %v3034_v61 = vpop.eup %3033 }
 0xa8d   :  { %1023 = vrot.lane.b32.xlu1 %v3034_v61, %s3123_s9 }
 0xafb   :  { %v922_v63 = vpop.permute.xlu0 %921 }
 0xafc   :  { %v924_v2 = vmul.f32 %v3030_v43, %v922_v63 }
 0xafe   :  { %1028 = vrot.lane.b32.xlu0 %v924_v2, %s3122_s30 }
 0xaff   :  { %v1024_v3 = vpop.permute.xlu1 %1023 }
 0xb00   :  { %v1026_v4 = vmul.f32 %v3028_v42, %v1024_v3 }
 0xb02   :  { %1103 = vrot.lane.b32.xlu1 %v1026_v4, %s3122_s30  ;;  %1203 = vperm.xlu0 %2989, %v3188_v8  }
 0xb06   :  { %2990 = vset.pattern.permute.xlu0 %v3128_v49 }
 0xb70   :  { %v1029_v5 = vpop.permute.xlu0 %1028 }
 0xb71   :  { %2655 = vmatmul.mubr.msk.f32.vlgmr.msra.gmra.mrb[6].mxu0 %vm52_vm0, %v1029_v5 }
 0xb72   :  { %2868 = vmatpush3.bf16.msra.mxu0 %v3229_v41  ;;  %2665 = vmatprep.mubr.msk.f32.mxu0 %vm3119_vm1, %v3120_v1 }
 0xb73   :  { %2869 = vmatprep.subr.bf16.mxu0 %v3118_v0 }
 0xb74   :  { %v1104_v7 = vpop.permute.xlu1 %1103 }
 0xb75   :  { %2677 = vmatmul.mubr.msk.f32.vlgmr.msra.gmra.mrb[8].mxu1 %vm52_vm0, %v1104_v7 }
 0xb76   :  { %2871 = vmatpush3.bf16.msra.mxu0 %v3235_v45  ;;  %2880 = vmatpush3.bf16.msra.mxu1 %v3222_v35 }
 0xb77   :  { %2881 = vmatprep.subr.bf16.mxu1 %v3118_v0  ;;  %2890 = vmatprep.subr.bf16.mxu0 %v3118_v0 }
 0xb78   :  { %2687 = vmatprep.mubr.msk.f32.mxu1 %vm3119_vm1, %v3120_v1 }
 0xb79   :  { %2666 = vmatmul.mubr.msk.f32.vlgmr.msra.gmra.mrb[6].mxu0 %vm52_vm0, %v1104_v7 }
 0xb7a   :  { %2883 = vmatpush3.bf16.msra.mxu1 %v3225_v37  ;;  %2892 = vmatpush3.bf16.msra.mxu0 %v3183_v6 }
 0xb7b   :  { %2884 = vmatprep.subr.bf16.mxu1 %v3118_v0  ;;  %2893 = vmatprep.subr.bf16.mxu0 %v3118_v0 }
 0xb7c   :  { %2709 = vmatprep.mubr.msk.f32.mxu0 %vm3119_vm1, %v3120_v1 }
 0xb7e   :  { %2895 = vmatpush3.bf16.msra.mxu0 %v3192_v10 }
 0xb7f   :  { %2896 = vmatprep.subr.bf16.mxu0 %v3118_v0 }
 0xb81   :  { %v1204_v9 = vpop.permute.xlu0 %1203 }
 0xb82   :  { %v1206_v11 = vmul.f32 %v3208_v13, %v1204_v9 }
 0xb84   :  { %v1207_v12 = vadd.f32 %v3214_v15, %v1206_v11 }
 0xc48   :  { %v1274_v14 = vpop.f32.mrb[8].mxu1 }
 0xc49   :  { %v1278_v16 = vadd.f32 %v1274_v14, %v1207_v12  ;;  %v2678_v17 = vpop.f32.mrb[9].mxu1 }
 0xc4b   :  { %v2388_v18 = vmul.f32 -1.442695, %v1278_v16 }
 0xc4c   :  { %v1173_v19 = vpop.f32.mrb[6].mxu0 }
 0xc4d   :  { %3035 = vpow2.f32 %v2388_v18  ;;  %v2947_v20 = vadd.f32 %v3264_v54, %v1173_v19  ;;  %v2667_v21 = vpop.f32.mrb[7].mxu0 }
 0xc4f   :  { %v2385_v22 = vmul.f32 -1.442695, %v2947_v20 }
 0xc51   :  { %3037 = vpow2.f32 %v2385_v22 }
 0xc57   :  { %v3036_v23 = vpop.eup %3035 }
 0xc58   :  { %v1282_v24 = vadd.f32 1.0, %v3036_v23 }
 0xc5a   :  { %3039 = vrcp.f32 %v1282_v24 }
 0xc5b   :  { %v3038_v25 = vpop.eup %3037 }
 0xc5c   :  { %v1180_v26 = vadd.f32 1.0, %v3038_v25 }
 0xc5e   :  { %3041 = vrcp.f32 %v1180_v26 }
 0xc64   :  { %v3040_v27 = vpop.eup %3039 }
 0xc65   :  { %v1285_v32 = vmul.f32 2.0, %v3040_v27  ;;  %v1287_v43 = vmul.f32 %v3040_v27, %v3357_v59 }
 0xc67   :  { %v2389_v33 = vadd.f32 -1.0, %v1285_v32 }
 0xc68   :  { %v3042_v28 = vpop.eup %3041 }
 0xc69   :  { %v1183_v29 = vmul.f32 2.0, %v3042_v28  ;;  %v1185_v39 = vmul.f32 %v3042_v28, %v3353_v56 }
 0xc6b   :  { %v2386_v30 = vadd.f32 -1.0, %v1183_v29 }
 0xc6d   :  { %1187 = vrot.lane.b32.xlu1 %v2386_v30, %s3123_s9 }
 0xc71   :  { %1289 = vrot.lane.b32.xlu1 %v2389_v33, %s3123_s9 }
 0xcdf   :  { %v1188_v34 = vpop.permute.xlu1 %1187 }
 0xce0   :  { %v1190_v31 = vmul.f32 %v3042_v28, %v1188_v34  ;;  %v3129_v34 = vmov 6  }
 0xce2   :  { %1192 = vrot.lane.b32.xlu0 %v1190_v31, %s3122_s30 }
 0xce3   :  { %v1290_v36 = vpop.permute.xlu1 %1289 }
 0xce4   :  { %v1292_v38 = vmul.f32 %v3040_v27, %v1290_v36 }
 0xce6   :  { %1294 = vrot.lane.b32.xlu1 %v1292_v38, %s3122_s30 }
 0xd54   :  { %v1193_v40 = vpop.permute.xlu0 %1192 }
 0xd55   :  { %v3394_v42 = vadd.f32 %v1193_v40, %v1185_v39 }
 0xd57   :  { %3043 = vtanh.f32 %v3394_v42 }
 0xd58   :  { %v1295_v44 = vpop.permute.xlu1 %1294 }
 0xd59   :  { %v3398_v46 = vadd.f32 %v1295_v44, %v1287_v43 }
 0xd5b   :  { %3045 = vtanh.f32 %v3398_v46 }
 0xd61   :  { %v3044_v47 = vpop.eup %3043 }
 0xd62   :  { %1198 = vrot.lane.b32.xlu0 %v3044_v47, %s3123_s9 }
 0xd65   :  { %v3046_v48 = vpop.eup %3045 }
 0xd66   :  { %1300 = vrot.lane.b32.xlu1 %v3046_v48, %s3123_s9 }
 0xdd4   :  { %v1199_v50 = vpop.permute.xlu0 %1198 }
 0xdd5   :  { %v1201_v51 = vmul.f32 %v3042_v28, %v1199_v50 }
 0xdd7   :  { %1305 = vrot.lane.b32.xlu0 %v1201_v51, %s3122_s30 }
 0xdd8   :  { %v1301_v52 = vpop.permute.xlu1 %1300 }
 0xdd9   :  { %v1303_v53 = vmul.f32 %v3040_v27, %v1301_v52 }
 0xddb   :  { %1380 = vrot.lane.b32.xlu1 %v1303_v53, %s3122_s30  ;;  %1480 = vperm.xlu0 %2990, %v3188_v8  }
 0xddf   :  { %2991 = vset.pattern.permute.xlu0 %v3129_v34 }
 0xe49   :  { %v1306_v55 = vpop.permute.xlu0 %1305 }
 0xe4a   :  { %2688 = vmatmul.mubr.msk.f32.vlgmr.msra.gmra.mrb[10].mxu1 %vm52_vm0, %v1306_v55 }
 0xe4b   :  { %2886 = vmatpush3.bf16.msra.mxu1 %v3229_v41  ;;  %2698 = vmatprep.mubr.msk.f32.mxu1 %vm3119_vm1, %v3120_v1 }
 0xe4c   :  { %2887 = vmatprep.subr.bf16.mxu1 %v3118_v0 }
 0xe4d   :  { %v1381_v56 = vpop.permute.xlu1 %1380 }
 0xe4e   :  { %2710 = vmatmul.mubr.msk.f32.vlgmr.msra.gmra.mrb[8].mxu0 %vm52_vm0, %v1381_v56 }
 0xe4f   :  { %2889 = vmatpush3.bf16.msra.mxu1 %v3235_v45  ;;  %2898 = vmatpush3.bf16.msra.mxu0 %v3222_v35 }
 0xe50   :  { %2899 = vmatprep.subr.bf16.mxu0 %v3118_v0  ;;  %2908 = vmatprep.subr.bf16.mxu1 %v3118_v0 }
 0xe51   :  { %2720 = vmatprep.mubr.msk.f32.mxu0 %vm3119_vm1, %v3120_v1 }
 0xe52   :  { %2699 = vmatmul.mubr.msk.f32.vlgmr.msra.gmra.mrb[10].mxu1 %vm52_vm0, %v1381_v56 }
 0xe53   :  { %2901 = vmatpush3.bf16.msra.mxu0 %v3225_v37  ;;  %2910 = vmatpush3.bf16.msra.mxu1 %v3183_v6 }
 0xe54   :  { %2902 = vmatprep.subr.bf16.mxu0 %v3118_v0  ;;  %2911 = vmatprep.subr.bf16.mxu1 %v3118_v0 }
 0xe55   :  { %2742 = vmatprep.mubr.msk.f32.mxu1 %vm3119_vm1, %v3120_v1 }
 0xe57   :  { %2913 = vmatpush3.bf16.msra.mxu1 %v3192_v10 }
 0xe58   :  { %2914 = vmatprep.subr.bf16.mxu1 %v3118_v0 }
 0xe5a   :  { %v1481_v57 = vpop.permute.xlu0 %1480 }
 0xe5b   :  { %v1483_v58 = vmul.f32 %v3208_v13, %v1481_v57 }
 0xe5d   :  { %v1484_v59 = vadd.f32 %v3214_v15, %v1483_v58 }
 0xf21   :  { %v1551_v60 = vpop.f32.mrb[8].mxu0 }
 0xf22   :  { %v1555_v61 = vadd.f32 %v1551_v60, %v1484_v59  ;;  %v2711_v62 = vpop.f32.mrb[9].mxu0 }
 0xf24   :  { %v2395_v63 = vmul.f32 -1.442695, %v1555_v61 }
 0xf25   :  { %v1450_v2 = vpop.f32.mrb[10].mxu1 }
 0xf26   :  { %3047 = vpow2.f32 %v2395_v63  ;;  %v2948_v3 = vadd.f32 %v3264_v54, %v1450_v2  ;;  %v2700_v4 = vpop.f32.mrb[11].mxu1 }
 0xf28   :  { %v2392_v5 = vmul.f32 -1.442695, %v2948_v3 }
 0xf2a   :  { %3049 = vpow2.f32 %v2392_v5 }
 0xf30   :  { %v3048_v7 = vpop.eup %3047 }
 0xf31   :  { %v1559_v9 = vadd.f32 1.0, %v3048_v7 }
 0xf33   :  { %3051 = vrcp.f32 %v1559_v9 }
 0xf34   :  { %v3050_v11 = vpop.eup %3049 }
 0xf35   :  { %v1457_v12 = vadd.f32 1.0, %v3050_v11 }
 0xf37   :  { %3053 = vrcp.f32 %v1457_v12 }
 0xf3d   :  { %v3052_v14 = vpop.eup %3051 }
 0xf3e   :  { %v1562_v19 = vmul.f32 2.0, %v3052_v14  ;;  %v1564_v28 = vmul.f32 %v3052_v14, %v3398_v46 }
 0xf40   :  { %v2396_v20 = vadd.f32 -1.0, %v1562_v19 }
 0xf41   :  { %v3054_v16 = vpop.eup %3053 }
 0xf42   :  { %v1460_v17 = vmul.f32 2.0, %v3054_v16  ;;  %v1462_v25 = vmul.f32 %v3054_v16, %v3394_v42 }
 0xf44   :  { %v2393_v18 = vadd.f32 -1.0, %v1460_v17  ;;  %v3130_v17 = vmov 7  }
 0xf46   :  { %1464 = vrot.lane.b32.xlu1 %v2393_v18, %s3123_s9 }
 0xf4a   :  { %1566 = vrot.lane.b32.xlu1 %v2396_v20, %s3123_s9 }
 0xfb8   :  { %v1465_v21 = vpop.permute.xlu1 %1464 }
 0xfb9   :  { %v1467_v22 = vmul.f32 %v3054_v16, %v1465_v21 }
 0xfbb   :  { %1469 = vrot.lane.b32.xlu0 %v1467_v22, %s3122_s30  ;;  %v3089_v22 = vld [vmem:[%s3546_s0] sm:$0xff] }
 0xfbc   :  { %v1567_v23 = vpop.permute.xlu1 %1566 }
 0xfbd   :  { %v1569_v24 = vmul.f32 %v3052_v14, %v1567_v23 }
 0xfbf   :  { %1571 = vrot.lane.b32.xlu1 %v1569_v24, %s3122_s30 }
0x102d   :  { %v1470_v26 = vpop.permute.xlu0 %1469 }
0x102e   :  { %v3435_v27 = vadd.f32 %v1470_v26, %v1462_v25  ;;  %v3090_v26 = vld [vmem:[%s3548_s2] ss:$0 sm:$0xff] }
0x1030   :  { %3055 = vtanh.f32 %v3435_v27 }
0x1031   :  { %v1572_v29 = vpop.permute.xlu1 %1571 }
0x1032   :  { %v3439_v30 = vadd.f32 %v1572_v29, %v1564_v28 }
0x1034   :  { %3057 = vtanh.f32 %v3439_v30 }
0x103a   :  { %v3056_v32 = vpop.eup %3055 }
0x103b   :  { %1475 = vrot.lane.b32.xlu0 %v3056_v32, %s3123_s9 }
0x103e   :  { %v3058_v33 = vpop.eup %3057 }
0x103f   :  { %1577 = vrot.lane.b32.xlu1 %v3058_v33, %s3123_s9 }
0x10ad   :  { %v1476_v31 = vpop.permute.xlu0 %1475 }
0x10ae   :  { %v1478_v36 = vmul.f32 %v3054_v16, %v1476_v31 }
0x10b0   :  { %1582 = vrot.lane.b32.xlu0 %v1478_v36, %s3122_s30 }
0x10b1   :  { %v1578_v38 = vpop.permute.xlu1 %1577 }
0x10b2   :  { %v1580_v39 = vmul.f32 %v3052_v14, %v1578_v38 }
0x10b4   :  { %1657 = vrot.lane.b32.xlu1 %v1580_v39, %s3122_s30  ;;  %1757 = vperm.xlu0 %2991, %v3188_v8  }
0x10b8   :  { %2992 = vset.pattern.permute.xlu0 %v3130_v17 }
0x1122   :  { %v1583_v40 = vpop.permute.xlu0 %1582 }
0x1123   :  { %2721 = vmatmul.mubr.msk.f32.vlgmr.msra.gmra.mrb[10].mxu0 %vm52_vm0, %v1583_v40 }
0x1124   :  { %2904 = vmatpush3.bf16.msra.mxu0 %v3229_v41  ;;  %2731 = vmatprep.mubr.msk.f32.mxu0 %vm3119_vm1, %v3120_v1 }
0x1125   :  { %2905 = vmatprep.subr.bf16.mxu0 %v3118_v0 }
0x1126   :  { %v1658_v42 = vpop.permute.xlu1 %1657 }
0x1127   :  { %2743 = vmatmul.mubr.msk.f32.vlgmr.msra.gmra.mrb[12].mxu1 %vm52_vm0, %v1658_v42 }
0x1128   :  { %2907 = vmatpush3.bf16.msra.mxu0 %v3235_v45  ;;  %2916 = vmatpush3.bf16.msra.mxu1 %v3222_v35 }
0x1129   :  { %2917 = vmatprep.subr.bf16.mxu1 %v3118_v0  ;;  %2926 = vmatprep.subr.bf16.mxu0 %v3118_v0 }
0x112a   :  { %2753 = vmatprep.mubr.msk.f32.mxu1 %vm3119_vm1, %v3120_v1 }
0x112b   :  { %2732 = vmatmul.mubr.msk.f32.vlgmr.msra.gmra.mrb[10].mxu0 %vm52_vm0, %v1658_v42 }
0x112c   :  { %2919 = vmatpush3.bf16.msra.mxu1 %v3225_v37  ;;  %2928 = vmatpush3.bf16.msra.mxu0 %v3183_v6 }
0x112d   :  { %2920 = vmatprep.subr.bf16.mxu1 %v3118_v0  ;;  %2929 = vmatprep.subr.bf16.mxu0 %v3118_v0 }
0x112e   :  { %2775 = vmatprep.mubr.msk.f32.mxu0 %vm3119_vm1, %v3120_v1 }
0x1130   :  { %2931 = vmatpush3.bf16.msra.mxu0 %v3192_v10 }
0x1131   :  { %2932 = vmatprep.subr.bf16.mxu0 %v3118_v0 }
0x1133   :  { %v1758_v8 = vpop.permute.xlu0 %1757 }
0x1134   :  { %v1760_v43 = vmul.f32 %v3208_v13, %v1758_v8 }
0x1136   :  { %v1761_v44 = vadd.f32 %v3214_v15, %v1760_v43 }
0x11fa   :  { %v1828_v46 = vpop.f32.mrb[12].mxu1 }
0x11fb   :  { %v1832_v47 = vadd.f32 %v1828_v46, %v1761_v44  ;;  %v2744_v48 = vpop.f32.mrb[13].mxu1 }
0x11fd   :  { %v2402_v6 = vmul.f32 -1.442695, %v1832_v47 }
0x11fe   :  { %v1727_v49 = vpop.f32.mrb[10].mxu0 }
0x11ff   :  { %3059 = vpow2.f32 %v2402_v6  ;;  %v2949_v50 = vadd.f32 %v3264_v54, %v1727_v49  ;;  %v2733_v51 = vpop.f32.mrb[11].mxu0 }
0x1201   :  { %v2399_v52 = vmul.f32 -1.442695, %v2949_v50 }
0x1203   :  { %3061 = vpow2.f32 %v2399_v52 }
0x1209   :  { %v3060_v53 = vpop.eup %3059 }
0x120a   :  { %v1836_v10 = vadd.f32 1.0, %v3060_v53 }
0x120c   :  { %3063 = vrcp.f32 %v1836_v10 }
0x120d   :  { %v3062_v55 = vpop.eup %3061 }
0x120e   :  { %v1734_v56 = vadd.f32 1.0, %v3062_v55 }
0x1210   :  { %3065 = vrcp.f32 %v1734_v56 }
0x1216   :  { %v3064_v13 = vpop.eup %3063 }
0x1217   :  { %v1839_v60 = vmul.f32 2.0, %v3064_v13  ;;  %v1841_v9 = vmul.f32 %v3064_v13, %v3439_v30 }
0x1219   :  { %v2403_v61 = vadd.f32 -1.0, %v1839_v60 }
0x121a   :  { %v3066_v57 = vpop.eup %3065 }
0x121b   :  { %v1737_v58 = vmul.f32 2.0, %v3066_v57  ;;  %v1739_v4 = vmul.f32 %v3066_v57, %v3435_v27 }
0x121d   :  { %v2400_v59 = vadd.f32 -1.0, %v1737_v58 }
0x121f   :  { %1741 = vrot.lane.b32.xlu1 %v2400_v59, %s3123_s9 }
0x1223   :  { %1843 = vrot.lane.b32.xlu1 %v2403_v61, %s3123_s9 }
0x1291   :  { %v1742_v62 = vpop.permute.xlu1 %1741 }
0x1292   :  { %v1744_v63 = vmul.f32 %v3066_v57, %v1742_v62 }
0x1294   :  { %1746 = vrot.lane.b32.xlu0 %v1744_v63, %s3122_s30 }
0x1295   :  { %v1844_v2 = vpop.permute.xlu1 %1843 }
0x1296   :  { %v1846_v3 = vmul.f32 %v3064_v13, %v1844_v2 }
0x1298   :  { %1848 = vrot.lane.b32.xlu1 %v1846_v3, %s3122_s30 }
0x1306   :  { %v1747_v5 = vpop.permute.xlu0 %1746 }
0x1307   :  { %v3476_v7 = vadd.f32 %v1747_v5, %v1739_v4 }
0x1309   :  { %3067 = vtanh.f32 %v3476_v7 }
0x130a   :  { %v1849_v11 = vpop.permute.xlu1 %1848 }
0x130b   :  { %v3480_v12 = vadd.f32 %v1849_v11, %v1841_v9 }
0x130d   :  { %3069 = vtanh.f32 %v3480_v12 }
0x1313   :  { %v3068_v14 = vpop.eup %3067 }
0x1314   :  { %1752 = vrot.lane.b32.xlu0 %v3068_v14, %s3123_s9 }
0x1317   :  { %v3070_v16 = vpop.eup %3069 }
0x1318   :  { %1854 = vrot.lane.b32.xlu1 %v3070_v16, %s3123_s9 }
0x1386   :  { %v1753_v18 = vpop.permute.xlu0 %1752 }
0x1387   :  { %v1755_v19 = vmul.f32 %v3066_v57, %v1753_v18 }
0x1389   :  { %1859 = vrot.lane.b32.xlu0 %v1755_v19, %s3122_s30 }
0x138a   :  { %v1855_v20 = vpop.permute.xlu1 %1854 }
0x138b   :  { %v1857_v21 = vmul.f32 %v3064_v13, %v1855_v20 }
0x138d   :  { %1934 = vrot.lane.b32.xlu1 %v1857_v21, %s3122_s30  ;;  %2034 = vperm.xlu0 %2992, %v3089_v22  }
0x13fb   :  { %v1860_v23 = vpop.permute.xlu0 %1859 }
0x13fc   :  { %2754 = vmatmul.mubr.msk.f32.vlgmr.msra.gmra.mrb[14].mxu1 %vm52_vm0, %v1860_v23 }
0x13fd   :  { %2922 = vmatpush3.bf16.msra.mxu1 %v3229_v41  ;;  %2764 = vmatprep.mubr.msk.f32.mxu1 %vm3119_vm1, %v3120_v1 }
0x13fe   :  { %2923 = vmatprep.subr.bf16.mxu1 %v3118_v0 }
0x13ff   :  { %v1935_v24 = vpop.permute.xlu1 %1934 }
0x1400   :  { %2776 = vmatmul.mubr.msk.f32.vlgmr.msra.gmra.mrb[12].mxu0 %vm52_vm0, %v1935_v24 }
0x1401   :  { %2925 = vmatpush3.bf16.msra.mxu1 %v3235_v45  ;;  %2934 = vmatpush3.bf16.msra.mxu0 %v3222_v35 }
0x1402   :  { %2935 = vmatprep.subr.bf16.mxu0 %v3118_v0  ;;  %2786 = vmatprep.mubr.msk.f32.mxu0 %vm3119_vm1, %v3120_v1 }
0x1404   :  { %2765 = vmatmul.mubr.msk.f32.vlgmr.msra.gmra.mrb[14].mxu1 %vm52_vm0, %v1935_v24 }
0x1405   :  { %2937 = vmatpush3.bf16.msra.mxu0 %v3225_v37 }
0x1406   :  { %2938 = vmatprep.subr.bf16.mxu0 %v3118_v0 }
0x140c   :  { %v2035_v25 = vpop.permute.xlu0 %2034 }
0x140d   :  { %v2037_v27 = vmul.f32 %v3090_v26, %v2035_v25  ;;  %v2347_v26 = vstv %s3549_s3 }
0x140f   :  { %v2038_v28 = vadd.f32 %v3214_v15, %v2037_v27 }
0x14d3   :  { %v2105_v35 = vpop.f32.mrb[12].mxu0 }
0x14d4   :  { %v2109_v29 = vadd.f32 %v2105_v35, %v2038_v28  ;;  %v2777_v30 = vpop.f32.mrb[13].mxu0 }
0x14d6   :  { %v2409_v32 = vmul.f32 -1.442695, %v2109_v29 }
0x14d7   :  { %v2004_v33 = vpop.f32.mrb[14].mxu1 }
0x14d8   :  { %3071 = vpow2.f32 %v2409_v32  ;;  %v2950_v34 = vadd.f32 %v3264_v54, %v2004_v33  ;;  %v2766_v31 = vpop.f32.mrb[15].mxu1 }
0x14da   :  { %v2406_v37 = vmul.f32 -1.442695, %v2950_v34 }
0x14dc   :  { %3073 = vpow2.f32 %v2406_v37 }
0x14e2   :  { %v3072_v36 = vpop.eup %3071 }
0x14e3   :  { %v2113_v38 = vadd.f32 1.0, %v3072_v36 }
0x14e5   :  { %3075 = vrcp.f32 %v2113_v38 }
0x14e6   :  { %v3074_v39 = vpop.eup %3073 }
0x14e7   :  { %v2011_v40 = vadd.f32 1.0, %v3074_v39 }
0x14e9   :  { %3077 = vrcp.f32 %v2011_v40 }
0x14ef   :  { %v3076_v42 = vpop.eup %3075 }
0x14f0   :  { %v2116_v44 = vmul.f32 2.0, %v3076_v42  ;;  %v2118_v53 = vmul.f32 %v3076_v42, %v3480_v12 }
0x14f2   :  { %v2410_v46 = vadd.f32 -1.0, %v2116_v44 }
0x14f3   :  { %v3078_v8 = vpop.eup %3077 }
0x14f4   :  { %v2014_v15 = vmul.f32 2.0, %v3078_v8  ;;  %v2016_v50 = vmul.f32 %v3078_v8, %v3476_v7 }
0x14f6   :  { %v2407_v43 = vadd.f32 -1.0, %v2014_v15 }
0x14f8   :  { %2018 = vrot.lane.b32.xlu1 %v2407_v43, %s3123_s9 }
0x14fc   :  { %2120 = vrot.lane.b32.xlu1 %v2410_v46, %s3123_s9 }
0x156a   :  { %v2019_v47 = vpop.permute.xlu1 %2018 }
0x156b   :  { %v2021_v48 = vmul.f32 %v3078_v8, %v2019_v47 }
0x156d   :  { %2023 = vrot.lane.b32.xlu0 %v2021_v48, %s3122_s30 }
0x156e   :  { %v2121_v6 = vpop.permute.xlu1 %2120 }
0x156f   :  { %v2123_v49 = vmul.f32 %v3076_v42, %v2121_v6 }
0x1571   :  { %2125 = vrot.lane.b32.xlu1 %v2123_v49, %s3122_s30 }
0x15df   :  { %v2024_v51 = vpop.permute.xlu0 %2023 }
0x15e0   :  { %v2026_v52 = vadd.f32 %v2024_v51, %v2016_v50 }
0x15e2   :  { %3079 = vtanh.f32 %v2026_v52 }
0x15e3   :  { %v2126_v10 = vpop.permute.xlu1 %2125 }
0x15e4   :  { %v2128_v55 = vadd.f32 %v2126_v10, %v2118_v53 }
0x15e6   :  { %3081 = vtanh.f32 %v2128_v55 }
0x15ec   :  { %v3080_v56 = vpop.eup %3079 }
0x15ed   :  { %2029 = vrot.lane.b32.xlu0 %v3080_v56, %s3123_s9 }
0x15f0   :  { %v3082_v13 = vpop.eup %3081 }
0x15f1   :  { %2131 = vrot.lane.b32.xlu1 %v3082_v13, %s3123_s9 }
0x165f   :  { %v2030_v57 = vpop.permute.xlu0 %2029 }
0x1660   :  { %v2032_v58 = vmul.f32 %v3078_v8, %v2030_v57 }
0x1662   :  { %2136 = vrot.lane.b32.xlu0 %v2032_v58, %s3122_s30 }
0x1663   :  { %v2132_v59 = vpop.permute.xlu1 %2131 }
0x1664   :  { %v2134_v60 = vmul.f32 %v3076_v42, %v2132_v59 }
0x1666   :  { %2211 = vrot.lane.b32.xlu1 %v2134_v60, %s3122_s30 }
0x16d4   :  { %v2137_v61 = vpop.permute.xlu0 %2136 }
0x16d5   :  { %2787 = vmatmul.mubr.msk.f32.vlgmr.msra.gmra.mrb[14].mxu0 %vm52_vm0, %v2137_v61 }
0x16d6   :  { %2940 = vmatpush3.bf16.msra.mxu0 %v3229_v41  ;;  %2797 = vmatprep.mubr.msk.f32.mxu0 %vm3119_vm1, %v3120_v1 }
0x16d7   :  { %2941 = vmatprep.subr.bf16.mxu0 %v3118_v0 }
0x16d8   :  { %v2212_v62 = vpop.permute.xlu1 %2211 }
0x16d9   :  { %2311 = vst.msk [vmem:[#allocation2] sm:$0xff] %vm52_vm0, %v2212_v62 }
0x16da   :  { %2943 = vmatpush3.bf16.msra.mxu0 %v3235_v45  ;;  %v2415_v45 = vld [vmem:[%s3548_s2 + $0x3] ss:$0 sm:$0xff] }
0x16dd   :  { %2798 = vmatmul.mubr.msk.f32.vlgmr.msra.gmra.mrb[14].mxu0 %vm52_vm0, %v2212_v62 }
0x17b0   :  { %v2281_v63 = vpop.f32.mrb[14].mxu0 }
0x17b1   :  { %v2951_v2 = vadd.f32 %v3264_v54, %v2281_v63  ;;  %v2799_v3 = vpop.f32.mrb[15].mxu0 }
0x17b3   :  { %v2413_v4 = vmul.f32 -1.442695, %v2951_v2 }
0x17b5   :  { %3083 = vpow2.f32 %v2413_v4 }
0x17bf   :  { %v3084_v5 = vpop.eup %3083 }
0x17c0   :  { %v2288_v41 = vadd.f32 1.0, %v3084_v5 }
0x17c2   :  { %3085 = vrcp.f32 %v2288_v41 }
0x17cc   :  { %v3086_v7 = vpop.eup %3085 }
0x17cd   :  { %v2291_v1 = vmul.f32 2.0, %v3086_v7  ;;  %v2293_v54 = vmul.f32 %v3086_v7, %v2026_v52 }
0x17cf   :  { %v2414_v9 = vadd.f32 -1.0, %v2291_v1 }
0x17d1   :  { %2295 = vrot.lane.b32.xlu0 %v2414_v9, %s3123_s9 }
0x1843   :  { %v2296_v0 = vpop.permute.xlu0 %2295 }
0x1844   :  { %v2298_v11 = vmul.f32 %v3086_v7, %v2296_v0 }
0x1846   :  { %2300 = vrot.lane.b32.xlu1 %v2298_v11, %s3122_s30 }
0x184a   :  { %2335 = vrot.lane.b32.xlu1 %v2415_v45, %s3131_s17 }
0x18b8   :  { %v2301_v12 = vpop.permute.xlu1 %2300 }
0x18b9   :  { %v2303_v14 = vadd.f32 %v2301_v12, %v2293_v54 }
0x18bb   :  { %3087 = vtanh.f32 %v2303_v14 }
0x18bc   :  { %v2336_v18 = vpop.permute.xlu1 %2335 }
0x18c5   :  { %v3088_v16 = vpop.eup %3087 }
0x18c6   :  { %2306 = vrot.lane.b32.xlu0 %v3088_v16, %s3123_s9 }
0x1938   :  { %v2307_v17 = vpop.permute.xlu0 %2306 }
0x1939   :  { %v2309_v19 = vmul.f32 %v3086_v7, %v2307_v17 }
0x193b   :  { %v2338_v20 = vmul.f32 %v2336_v18, %v2309_v19 }
0x193d   :  { %2340 = vrot.lane.b32.xlu0 %v2338_v20, %s3122_s30 }
0x1941   :  { %2313 = vrot.lane.b32.xlu0 %v2128_v55, %s3131_s17 }
0x1945   :  { %2318 = vrot.lane.b32.xlu0 %v2309_v19, %s3122_s30 }
0x1949   :  { %2323 = vrot.lane.b32.xlu0 %v2303_v14, %s3131_s17 }
0x19af   :  { %v2341_v21 = vpop.permute.xlu0 %2340 }
0x19b0   :  { %v2343_v22 = vsel %vm52_vm0, %v2341_v21, 0.0 }
0x19b1   :  { %2344 = vadd.xlane.f32.xlu1 %v2343_v22 }
0x19b3   :  { %v2314_v23 = vpop.permute.xlu0 %2313 }
0x19b4   :  { %2316 = vst.msk [vmem:[#allocation2 + $0x8] sm:$0xff] %vm52_vm0, %v2314_v23 }
0x19b7   :  { %v2319_v24 = vpop.permute.xlu0 %2318 }
0x19b8   :  { %2321 = vst.msk [vmem:[#allocation2 + $0x10] sm:$0xff] %vm52_vm0, %v2319_v24 }
0x19bb   :  { %v2324_v25 = vpop.permute.xlu0 %2323 }
0x19bc   :  { %2326 = vst.msk [vmem:[#allocation2 + $0x18] sm:$0xff] %vm52_vm0, %v2324_v25 }
0x1a3e   :  { %v2345_v27 = vpop.xlane.xlu1 %2344 }
0x1a3f   :  { %v2348_v28 = vadd.f32 %v2347_v26, %v2345_v27 }
0x1a41   :  { %2350 = vst.msk [vmem:[%s3550_s4] sm:$0xff] %vm2349_vm2, %v2348_v28 }
0x1a42   :  { %2355 = vsyncpa [#allocation5], 1 }

</bundles_post_ra>
